<compile_context>
chip_gen: v6e
topology: v6e:2x2x1
jax: 0.10.0
libtpu: 0.0.40
codegen_flags: <defaults>
</compile_context>

<pallas_src>
import jax
import jax.numpy as jnp
from jax import lax
from jax.experimental import pallas as pl
from jax.experimental.pallas import tpu as pltpu


def _make_kernel(H, W, M, scale):
    HW = H * W

    def kernel(x_ref, w1x1_ref, b1x1_ref, w2b_ref, b2b_ref,
               w2c_ref, b2c_ref, wl1_ref, wl2_ref, bl_ref, o_ref):
        x_bf = x_ref[...]                                     # (M, Cp) bf16
        x = x_bf.astype(jnp.float32)                          # f32 residual

        # Row-boundary masks (flat row index r within the block; each block
        # holds whole images).  The modulos are single AND ops because W and
        # H*W are powers of two here; for general shapes precompute these
        # host-side and pass them in as an extra input.
        r = lax.broadcasted_iota(jnp.int32, (M, 1), 0)
        w_idx = r % W
        hw_idx = r % HW
        m_left = w_idx >= 1                 # tap at w-1 is valid
        m_right = w_idx < (W - 1)           # tap at w+1 is valid
        m_up = hw_idx >= W                  # tap at h-1 is valid
        m_down = hw_idx < (H - 1) * W       # tap at h+1 is valid

        def conv3(act_bf, w3_ref, bias_ref, shift, m_lo, m_hi):
            # 3-tap conv along rows as matmul-then-roll: roll/mask the f32
            # outputs of the off-centre taps (equivalent to rolling the input
            # since the matmul is per-row).
            d0 = jnp.dot(act_bf, w3_ref[0], preferred_element_type=jnp.float32)
            d1 = jnp.dot(act_bf, w3_ref[1], preferred_element_type=jnp.float32)
            d2 = jnp.dot(act_bf, w3_ref[2], preferred_element_type=jnp.float32)
            acc = d1 + bias_ref[...]
            acc = acc + jnp.where(m_lo, pltpu.roll(d0, shift=shift, axis=0), 0.0)
            acc = acc + jnp.where(m_hi, pltpu.roll(d2, shift=M - shift, axis=0), 0.0)
            return jnp.maximum(acc, 0.0)

        # Fused 1x1 convs [branch1 | branch2a] (+ folded BN) + ReLU: one
        # (M, Cp) x (Cp, 384) matmul.
        y = jnp.maximum(
            jnp.dot(x_bf, w1x1_ref[...], preferred_element_type=jnp.float32)
            + b1x1_ref[...], 0.0)                             # (M, 384) f32
        br1_bf = y[:, :192].astype(jnp.bfloat16)              # branch1
        b2_bf = y[:, 192:].astype(jnp.bfloat16)               # branch2a

        # branch2 (b): (1,3) conv along W.
        t_bf = conv3(b2_bf, w2b_ref, b2b_ref, 1, m_left, m_right
                     ).astype(jnp.bfloat16)                   # (M, 224)

        # branch2 (c): (3,1) conv along H.
        br2_bf = conv3(t_bf, w2c_ref, b2c_ref, W, m_up, m_down
                       ).astype(jnp.bfloat16)                 # (M, 256)

        # linear_conv over concat([branch1, branch2], channel) as split matmul.
        lin = (jnp.dot(br1_bf, wl1_ref[...], preferred_element_type=jnp.float32)
               + jnp.dot(br2_bf, wl2_ref[...], preferred_element_type=jnp.float32)
               + bl_ref[...])                                  # (M, Cp) f32

        # Residual + final ReLU in f32; store as lane-dense bf16 slab.
        o_ref[...] = jnp.maximum(lin * scale + x, 0.0).astype(o_ref.dtype)

    return kernel


def inception_resnet_c_pallas(x_nhwc, params, scale=0.2, images_per_block=None):
    """params = (w1x1, b1x1, w2b, b2b, w2c, b2c, wl1, wl2, bl), see __main__."""
    w1x1, b1x1, w2b, b2b, w2c, b2c, wl1, wl2, bl = params
    N, H, W, Cin = x_nhwc.shape
    rows_per_image = H * W

    # --- lane-dense channel padding for narrow-Cin configs (demo Cin=32) ---
    Cp = ((Cin + 127) // 128) * 128 if Cin < 128 else Cin
    pad_c = Cp - Cin
    if pad_c:
        x_nhwc = jnp.pad(x_nhwc, ((0, 0), (0, 0), (0, 0), (0, pad_c)))
        w1x1 = jnp.pad(w1x1, ((0, pad_c), (0, 0)))
        wl1 = jnp.pad(wl1, ((0, 0), (0, pad_c)))
        wl2 = jnp.pad(wl2, ((0, 0), (0, pad_c)))
        bl = jnp.pad(bl, ((0, 0), (0, pad_c)))
    kparams = (w1x1, b1x1, w2b, b2b, w2c, b2c, wl1, wl2, bl)

    # --- grid sizing: >=2 steps when possible so DMA pipelines with compute.
    # On v7x pick images_per_block so the grid length is a multiple of 2 and
    # each TensorCore gets >=2-3 steps (64 MiB VMEM budget).
    if images_per_block is None:
        ipb = max(1, min(N, max(1, 1024 // rows_per_image)))
        while ipb > 1 and (N % ipb != 0 or N // ipb < 2):
            ipb -= 1
        images_per_block = ipb
    assert N % images_per_block == 0
    M = images_per_block * rows_per_image
    if M % 8 != 0:                      # keep sublane-aligned blocks
        images_per_block = N
        M = N * rows_per_image
    n_blocks = N // images_per_block
    # The roll boundary masks require every grid block to hold whole images.
    assert M == images_per_block * rows_per_image

    x_flat = x_nhwc.reshape(N * rows_per_image, Cp).astype(jnp.bfloat16)
    kernel = _make_kernel(H, W, M, scale)

    def full_spec(shape):
        nd = len(shape)
        return pl.BlockSpec(shape, lambda b, _nd=nd: (0,) * _nd)

    in_specs = ([pl.BlockSpec((M, Cp), lambda b: (b, 0))]
                + [full_spec(p.shape) for p in kparams])
    out_specs = pl.BlockSpec((M, Cp), lambda b: (b, 0))

    # Advisory cost estimate (helps XLA schedule around the custom call).
    flops = 2 * N * rows_per_image * (Cp * 384 + 192 * 224 * 3
                                      + 224 * 256 * 3 + 192 * Cp + 256 * Cp)
    weight_bytes = sum(int(p.size) * p.dtype.itemsize for p in kparams)
    bytes_accessed = int(x_flat.size) * 2 + N * rows_per_image * Cp * 2 + weight_bytes
    cost = pl.CostEstimate(flops=flops, transcendentals=0,
                           bytes_accessed=int(bytes_accessed))

    out_flat = pl.pallas_call(
        kernel,
        out_shape=jax.ShapeDtypeStruct((N * rows_per_image, Cp), jnp.bfloat16),
        grid_spec=pltpu.PrefetchScalarGridSpec(
            num_scalar_prefetch=0, grid=(n_blocks,),
            in_specs=in_specs, out_specs=out_specs),
        compiler_params=pltpu.CompilerParams(
            dimension_semantics=("parallel",),
            # 48 MiB: fits v7x's 64 MiB physical VMEM with headroom; well
            # under v5e/v6e's 128 MiB.
            vmem_limit_bytes=48 * 1024 * 1024),
        cost_estimate=cost,
    )(x_flat, *kparams)

    out = out_flat[:, :Cin].reshape(N, H, W, Cin)
    return out


def fold_bn(w_oihw, gamma, beta, mean, var, eps=1e-5):
    s = gamma / jnp.sqrt(var + eps)
    return w_oihw * s[:, None, None, None], beta - mean * s


def reference(x_nchw, folded, scale):
    # Pure-JAX (XLA conv) reference with the same folded f32 parameters.
    def conv(x, w, b):
        y = lax.conv_general_dilated(
            x, w, window_strides=(1, 1), padding='SAME',
            dimension_numbers=('NCHW', 'OIHW', 'NCHW'))
        return y + b[None, :, None, None]

    def cbr(x, w, b):
        return jax.nn.relu(conv(x, w, b))

    (w1, b1), (w2a, b2a), (w2b, b2b), (w2c, b2c), (wl, bl) = folded
    br1 = cbr(x_nchw, w1, b1)
    t = cbr(x_nchw, w2a, b2a)
    t = cbr(t, w2b, b2b)
    br2 = cbr(t, w2c, b2c)
    mixed = jnp.concatenate([br1, br2], axis=1)
    lin = conv(mixed, wl, bl)
    return jax.nn.relu(lin * scale + x_nchw)


if __name__ == "__main__":
    key = jax.random.PRNGKey(0)
    N, Cin, H, W = 2, 32, 8, 8
    scale = 0.2

    ks = list(jax.random.split(key, 16))
    kit = iter(ks)

    def nrm(k, shape, std=0.1):
        return std * jax.random.normal(k, shape, jnp.float32)

    # Raw conv weights (PyTorch OIHW layout), no conv bias except linear_conv.
    w1_raw = nrm(next(kit), (192, Cin, 1, 1))
    w2a_raw = nrm(next(kit), (192, Cin, 1, 1))
    w2b_raw = nrm(next(kit), (224, 192, 1, 3))
    w2c_raw = nrm(next(kit), (256, 224, 3, 1))
    wl_raw = nrm(next(kit), (Cin, 448, 1, 1))
    bl_raw = nrm(next(kit), (Cin,))

    def bn_params(k, c):
        k1, k2, k3, k4 = jax.random.split(k, 4)
        gamma = 1.0 + 0.1 * jax.random.normal(k1, (c,), jnp.float32)
        beta = 0.1 * jax.random.normal(k2, (c,), jnp.float32)
        mean = 0.1 * jax.random.normal(k3, (c,), jnp.float32)
        var = 0.5 + jax.random.uniform(k4, (c,), jnp.float32)
        return gamma, beta, mean, var

    w1f, b1f = fold_bn(w1_raw, *bn_params(next(kit), 192))
    w2af, b2af = fold_bn(w2a_raw, *bn_params(next(kit), 192))
    w2bf, b2bf = fold_bn(w2b_raw, *bn_params(next(kit), 224))
    w2cf, b2cf = fold_bn(w2c_raw, *bn_params(next(kit), 256))

    # Rearrange folded weights for the NHWC matmul kernel.  Matmul operands in
    # bf16 (MXU-native); biases stay f32 (VPU path).
    bf = jnp.bfloat16
    w1_k = jnp.transpose(w1f[:, :, 0, 0]).astype(bf)               # (Cin, 192)
    w2a_k = jnp.transpose(w2af[:, :, 0, 0]).astype(bf)             # (Cin, 192)
    # Host-side fusion of the two 1x1 convs: [branch1 | branch2a].
    w1x1_k = jnp.concatenate([w1_k, w2a_k], axis=1)                # (Cin, 384)
    b1x1_k = jnp.concatenate([b1f[None, :], b2af[None, :]], axis=1)  # (1, 384)
    w2b_k = jnp.transpose(w2bf[:, :, 0, :], (2, 1, 0)).astype(bf)  # (3,192,224)
    b2b_k = b2bf[None, :]                                          # (1, 224)
    w2c_k = jnp.transpose(w2cf[:, :, :, 0], (2, 1, 0)).astype(bf)  # (3,224,256)
    b2c_k = b2cf[None, :]                                          # (1, 256)
    wl_k = jnp.transpose(wl_raw[:, :, 0, 0])                       # (448, Cin)
    wl1_k = wl_k[:192, :].astype(bf)                               # (192, Cin)
    wl2_k = wl_k[192:, :].astype(bf)                               # (256, Cin)
    bl_k = bl_raw[None, :]                                         # (1, Cin)

    params = (w1x1_k, b1x1_k, w2b_k, b2b_k, w2c_k, b2c_k,
              wl1_k, wl2_k, bl_k)

    x_nchw = jax.random.normal(next(kit), (N, Cin, H, W), jnp.float32)
    x_nhwc = jnp.transpose(x_nchw, (0, 2, 3, 1))

    out_nhwc = jax.block_until_ready(
        inception_resnet_c_pallas(x_nhwc, params, scale=scale))
    out_nchw = jnp.transpose(out_nhwc.astype(jnp.float32), (0, 3, 1, 2))

    ref = reference(
        x_nchw,
        [(w1f, b1f), (w2af, b2af), (w2bf, b2bf), (w2cf, b2cf),
         (wl_raw, bl_raw)],
        scale)

    assert out_nchw.shape == (N, Cin, H, W)
    max_err = float(jnp.max(jnp.abs(out_nchw - ref)))
    # bf16 matmul operands + bf16 activation I/O slabs vs f32 XLA reference.
    assert jnp.allclose(out_nchw, ref, atol=3e-2, rtol=3e-2), max_err
    print("KERNEL_OK")
</pallas_src>

<mosaic_0001>
module attributes {stable_mosaic.version = 11 : i64} {
  func.func @kernel(%arg0: i32, %arg1: memref<64x128xbf16, #tpu.memory_space<vmem>>, %arg2: memref<128x384xbf16, #tpu.memory_space<vmem>>, %arg3: memref<1x384xf32, #tpu.memory_space<vmem>>, %arg4: memref<3x192x224xbf16, #tpu.memory_space<vmem>>, %arg5: memref<1x224xf32, #tpu.memory_space<vmem>>, %arg6: memref<3x224x256xbf16, #tpu.memory_space<vmem>>, %arg7: memref<1x256xf32, #tpu.memory_space<vmem>>, %arg8: memref<192x128xbf16, #tpu.memory_space<vmem>>, %arg9: memref<256x128xbf16, #tpu.memory_space<vmem>>, %arg10: memref<1x128xf32, #tpu.memory_space<vmem>>, %arg11: memref<64x128xbf16, #tpu.memory_space<vmem>>) attributes {dimension_semantics = [#tpu.dimension_semantics<parallel>], iteration_bounds = array<i64: 2>, scalar_prefetch = 0 : i64, scratch_operands = 0 : i64, tpu.core_type = #tpu.core_type<tc>, window_params = [{transform_indices = @transform_0, window_bounds = array<i64: 64, 128>}, {pipeline_mode = #tpu.pipeline_mode<synchronous>, transform_indices = @transform_1, window_bounds = array<i64: 128, 384>}, {pipeline_mode = #tpu.pipeline_mode<synchronous>, transform_indices = @transform_2, window_bounds = array<i64: 1, 384>}, {pipeline_mode = #tpu.pipeline_mode<synchronous>, transform_indices = @transform_3, window_bounds = array<i64: 3, 192, 224>}, {pipeline_mode = #tpu.pipeline_mode<synchronous>, transform_indices = @transform_4, window_bounds = array<i64: 1, 224>}, {pipeline_mode = #tpu.pipeline_mode<synchronous>, transform_indices = @transform_5, window_bounds = array<i64: 3, 224, 256>}, {pipeline_mode = #tpu.pipeline_mode<synchronous>, transform_indices = @transform_6, window_bounds = array<i64: 1, 256>}, {pipeline_mode = #tpu.pipeline_mode<synchronous>, transform_indices = @transform_7, window_bounds = array<i64: 192, 128>}, {pipeline_mode = #tpu.pipeline_mode<synchronous>, transform_indices = @transform_8, window_bounds = array<i64: 256, 128>}, {pipeline_mode = #tpu.pipeline_mode<synchronous>, transform_indices = @transform_9, window_bounds = array<i64: 1, 128>}, {transform_indices = @transform_10, window_bounds = array<i64: 64, 128>}]} {
    %c0 = arith.constant 0 : index
    %c0_0 = arith.constant 0 : index
    %0 = vector.load %arg1[%c0, %c0_0] : memref<64x128xbf16, #tpu.memory_space<vmem>>, vector<64x128xbf16>
    %1 = arith.extf %0 : vector<64x128xbf16> to vector<64x128xf32>
    %2 = tpu.iota {dimensions = array<i32: 0>} : vector<64x1xi32>
    %c8_i32 = arith.constant 8 : i32
    %c0_i32 = arith.constant 0 : i32
    %3 = arith.cmpi eq, %c8_i32, %c0_i32 : i32
    %c1_i32 = arith.constant 1 : i32
    %4 = arith.select %3, %c1_i32, %c8_i32 : i32
    %5 = vector.broadcast %4 : i32 to vector<64x1xi32>
    %6 = arith.remsi %2, %5 : vector<64x1xi32>
    %c0_i32_1 = arith.constant 0 : i32
    %7 = vector.broadcast %c0_i32_1 : i32 to vector<64x1xi32>
    %8 = arith.cmpi ne, %6, %7 : vector<64x1xi32>
    %c0_i32_2 = arith.constant 0 : i32
    %9 = vector.broadcast %c0_i32_2 : i32 to vector<64x1xi32>
    %10 = arith.cmpi slt, %6, %9 : vector<64x1xi32>
    %c0_i32_3 = arith.constant 0 : i32
    %11 = arith.cmpi slt, %4, %c0_i32_3 : i32
    %12 = vector.broadcast %11 : i1 to vector<64x1xi1>
    %13 = vector.broadcast %12 : vector<64x1xi1> to vector<64x1xi1>
    %14 = arith.xori %10, %13 : vector<64x1xi1>
    %15 = arith.andi %14, %8 : vector<64x1xi1>
    %16 = vector.broadcast %4 : i32 to vector<64x1xi32>
    %17 = arith.addi %6, %16 : vector<64x1xi32>
    %18 = arith.select %15, %17, %6 : vector<64x1xi1>, vector<64x1xi32>
    %c64_i32 = arith.constant 64 : i32
    %c0_i32_4 = arith.constant 0 : i32
    %19 = arith.cmpi eq, %c64_i32, %c0_i32_4 : i32
    %c1_i32_5 = arith.constant 1 : i32
    %20 = arith.select %19, %c1_i32_5, %c64_i32 : i32
    %21 = vector.broadcast %20 : i32 to vector<64x1xi32>
    %22 = arith.remsi %2, %21 : vector<64x1xi32>
    %c0_i32_6 = arith.constant 0 : i32
    %23 = vector.broadcast %c0_i32_6 : i32 to vector<64x1xi32>
    %24 = arith.cmpi ne, %22, %23 : vector<64x1xi32>
    %c0_i32_7 = arith.constant 0 : i32
    %25 = vector.broadcast %c0_i32_7 : i32 to vector<64x1xi32>
    %26 = arith.cmpi slt, %22, %25 : vector<64x1xi32>
    %c0_i32_8 = arith.constant 0 : i32
    %27 = arith.cmpi slt, %20, %c0_i32_8 : i32
    %28 = vector.broadcast %27 : i1 to vector<64x1xi1>
    %29 = vector.broadcast %28 : vector<64x1xi1> to vector<64x1xi1>
    %30 = arith.xori %26, %29 : vector<64x1xi1>
    %31 = arith.andi %30, %24 : vector<64x1xi1>
    %32 = vector.broadcast %20 : i32 to vector<64x1xi32>
    %33 = arith.addi %22, %32 : vector<64x1xi32>
    %34 = arith.select %31, %33, %22 : vector<64x1xi1>, vector<64x1xi32>
    %c1_i32_9 = arith.constant 1 : i32
    %35 = vector.broadcast %c1_i32_9 : i32 to vector<64x1xi32>
    %36 = arith.cmpi sge, %18, %35 : vector<64x1xi32>
    %c7_i32 = arith.constant 7 : i32
    %37 = vector.broadcast %c7_i32 : i32 to vector<64x1xi32>
    %38 = arith.cmpi slt, %18, %37 : vector<64x1xi32>
    %c8_i32_10 = arith.constant 8 : i32
    %39 = vector.broadcast %c8_i32_10 : i32 to vector<64x1xi32>
    %40 = arith.cmpi sge, %34, %39 : vector<64x1xi32>
    %c56_i32 = arith.constant 56 : i32
    %41 = vector.broadcast %c56_i32 : i32 to vector<64x1xi32>
    %42 = arith.cmpi slt, %34, %41 : vector<64x1xi32>
    %c0_11 = arith.constant 0 : index
    %c0_12 = arith.constant 0 : index
    %43 = vector.load %arg2[%c0_11, %c0_12] : memref<128x384xbf16, #tpu.memory_space<vmem>>, vector<128x384xbf16>
    %cst = arith.constant dense<0.000000e+00> : vector<64x384xf32>
    %44 = tpu.matmul %0, %43, %cst {dimension_numbers = #tpu.dot_dimension_numbers<[1], [0], [0], [1], [0, 0, 1, 1], [], []>} : vector<64x128xbf16>, vector<128x384xbf16>, vector<64x384xf32> -> vector<64x384xf32>
    %c0_13 = arith.constant 0 : index
    %c0_14 = arith.constant 0 : index
    %45 = vector.load %arg3[%c0_13, %c0_14] : memref<1x384xf32, #tpu.memory_space<vmem>>, vector<1x384xf32>
    %46 = vector.broadcast %45 : vector<1x384xf32> to vector<64x384xf32>
    %47 = arith.addf %44, %46 : vector<64x384xf32>
    %cst_15 = arith.constant 0.000000e+00 : f32
    %48 = vector.broadcast %cst_15 : f32 to vector<64x384xf32>
    %49 = arith.maximumf %47, %48 : vector<64x384xf32>
    %50 = vector.extract_strided_slice %49 {offsets = [0, 0], sizes = [64, 192], strides = [1, 1]} : vector<64x384xf32> to vector<64x192xf32>
    %51 = arith.truncf %50 : vector<64x192xf32> to vector<64x192xbf16>
    %52 = vector.extract_strided_slice %49 {offsets = [0, 192], sizes = [64, 192], strides = [1, 1]} : vector<64x384xf32> to vector<64x192xf32>
    %53 = arith.truncf %52 : vector<64x192xf32> to vector<64x192xbf16>
    %c0_16 = arith.constant 0 : index
    %c0_17 = arith.constant 0 : index
    %c0_18 = arith.constant 0 : index
    %54 = vector.load %arg4[%c0_16, %c0_17, %c0_18] : memref<3x192x224xbf16, #tpu.memory_space<vmem>>, vector<1x192x224xbf16>
    %55 = vector.shape_cast %54 : vector<1x192x224xbf16> to vector<192x224xbf16>
    %cst_19 = arith.constant dense<0.000000e+00> : vector<64x224xf32>
    %56 = tpu.matmul %53, %55, %cst_19 {dimension_numbers = #tpu.dot_dimension_numbers<[1], [0], [0], [1], [0, 0, 1, 1], [], []>} : vector<64x192xbf16>, vector<192x224xbf16>, vector<64x224xf32> -> vector<64x224xf32>
    %c1 = arith.constant 1 : index
    %c0_20 = arith.constant 0 : index
    %c0_21 = arith.constant 0 : index
    %57 = vector.load %arg4[%c1, %c0_20, %c0_21] : memref<3x192x224xbf16, #tpu.memory_space<vmem>>, vector<1x192x224xbf16>
    %58 = vector.shape_cast %57 : vector<1x192x224xbf16> to vector<192x224xbf16>
    %cst_22 = arith.constant dense<0.000000e+00> : vector<64x224xf32>
    %59 = tpu.matmul %53, %58, %cst_22 {dimension_numbers = #tpu.dot_dimension_numbers<[1], [0], [0], [1], [0, 0, 1, 1], [], []>} : vector<64x192xbf16>, vector<192x224xbf16>, vector<64x224xf32> -> vector<64x224xf32>
    %c2 = arith.constant 2 : index
    %c0_23 = arith.constant 0 : index
    %c0_24 = arith.constant 0 : index
    %60 = vector.load %arg4[%c2, %c0_23, %c0_24] : memref<3x192x224xbf16, #tpu.memory_space<vmem>>, vector<1x192x224xbf16>
    %61 = vector.shape_cast %60 : vector<1x192x224xbf16> to vector<192x224xbf16>
    %cst_25 = arith.constant dense<0.000000e+00> : vector<64x224xf32>
    %62 = tpu.matmul %53, %61, %cst_25 {dimension_numbers = #tpu.dot_dimension_numbers<[1], [0], [0], [1], [0, 0, 1, 1], [], []>} : vector<64x192xbf16>, vector<192x224xbf16>, vector<64x224xf32> -> vector<64x224xf32>
    %c0_26 = arith.constant 0 : index
    %c0_27 = arith.constant 0 : index
    %63 = vector.load %arg5[%c0_26, %c0_27] : memref<1x224xf32, #tpu.memory_space<vmem>>, vector<1x224xf32>
    %64 = vector.broadcast %63 : vector<1x224xf32> to vector<64x224xf32>
    %65 = arith.addf %59, %64 : vector<64x224xf32>
    %c1_i32_28 = arith.constant 1 : i32
    %66 = tpu.dynamic_rotate %56 by %c1_i32_28 dim 0 : vector<64x224xf32>, i32 -> vector<64x224xf32>
    %cst_29 = arith.constant 0.000000e+00 : f32
    %67 = vector.shape_cast %36 : vector<64x1xi1> to vector<64x1xi1>
    %68 = vector.broadcast %67 : vector<64x1xi1> to vector<64x224xi1>
    %69 = vector.broadcast %cst_29 : f32 to vector<64x224xf32>
    %70 = arith.select %68, %66, %69 : vector<64x224xi1>, vector<64x224xf32>
    %71 = arith.addf %65, %70 : vector<64x224xf32>
    %c63_i32 = arith.constant 63 : i32
    %72 = tpu.dynamic_rotate %62 by %c63_i32 dim 0 : vector<64x224xf32>, i32 -> vector<64x224xf32>
    %cst_30 = arith.constant 0.000000e+00 : f32
    %73 = vector.shape_cast %38 : vector<64x1xi1> to vector<64x1xi1>
    %74 = vector.broadcast %73 : vector<64x1xi1> to vector<64x224xi1>
    %75 = vector.broadcast %cst_30 : f32 to vector<64x224xf32>
    %76 = arith.select %74, %72, %75 : vector<64x224xi1>, vector<64x224xf32>
    %77 = arith.addf %71, %76 : vector<64x224xf32>
    %cst_31 = arith.constant 0.000000e+00 : f32
    %78 = vector.broadcast %cst_31 : f32 to vector<64x224xf32>
    %79 = arith.maximumf %77, %78 : vector<64x224xf32>
    %80 = arith.truncf %79 : vector<64x224xf32> to vector<64x224xbf16>
    %c0_32 = arith.constant 0 : index
    %c0_33 = arith.constant 0 : index
    %c0_34 = arith.constant 0 : index
    %81 = vector.load %arg6[%c0_32, %c0_33, %c0_34] : memref<3x224x256xbf16, #tpu.memory_space<vmem>>, vector<1x224x256xbf16>
    %82 = vector.shape_cast %81 : vector<1x224x256xbf16> to vector<224x256xbf16>
    %cst_35 = arith.constant dense<0.000000e+00> : vector<64x256xf32>
    %83 = tpu.matmul %80, %82, %cst_35 {dimension_numbers = #tpu.dot_dimension_numbers<[1], [0], [0], [1], [0, 0, 1, 1], [], []>} : vector<64x224xbf16>, vector<224x256xbf16>, vector<64x256xf32> -> vector<64x256xf32>
    %c1_36 = arith.constant 1 : index
    %c0_37 = arith.constant 0 : index
    %c0_38 = arith.constant 0 : index
    %84 = vector.load %arg6[%c1_36, %c0_37, %c0_38] : memref<3x224x256xbf16, #tpu.memory_space<vmem>>, vector<1x224x256xbf16>
    %85 = vector.shape_cast %84 : vector<1x224x256xbf16> to vector<224x256xbf16>
    %cst_39 = arith.constant dense<0.000000e+00> : vector<64x256xf32>
    %86 = tpu.matmul %80, %85, %cst_39 {dimension_numbers = #tpu.dot_dimension_numbers<[1], [0], [0], [1], [0, 0, 1, 1], [], []>} : vector<64x224xbf16>, vector<224x256xbf16>, vector<64x256xf32> -> vector<64x256xf32>
    %c2_40 = arith.constant 2 : index
    %c0_41 = arith.constant 0 : index
    %c0_42 = arith.constant 0 : index
    %87 = vector.load %arg6[%c2_40, %c0_41, %c0_42] : memref<3x224x256xbf16, #tpu.memory_space<vmem>>, vector<1x224x256xbf16>
    %88 = vector.shape_cast %87 : vector<1x224x256xbf16> to vector<224x256xbf16>
    %cst_43 = arith.constant dense<0.000000e+00> : vector<64x256xf32>
    %89 = tpu.matmul %80, %88, %cst_43 {dimension_numbers = #tpu.dot_dimension_numbers<[1], [0], [0], [1], [0, 0, 1, 1], [], []>} : vector<64x224xbf16>, vector<224x256xbf16>, vector<64x256xf32> -> vector<64x256xf32>
    %c0_44 = arith.constant 0 : index
    %c0_45 = arith.constant 0 : index
    %90 = vector.load %arg7[%c0_44, %c0_45] : memref<1x256xf32, #tpu.memory_space<vmem>>, vector<1x256xf32>
    %91 = vector.broadcast %90 : vector<1x256xf32> to vector<64x256xf32>
    %92 = arith.addf %86, %91 : vector<64x256xf32>
    %c8_i32_46 = arith.constant 8 : i32
    %93 = tpu.dynamic_rotate %83 by %c8_i32_46 dim 0 : vector<64x256xf32>, i32 -> vector<64x256xf32>
    %cst_47 = arith.constant 0.000000e+00 : f32
    %94 = vector.shape_cast %40 : vector<64x1xi1> to vector<64x1xi1>
    %95 = vector.broadcast %94 : vector<64x1xi1> to vector<64x256xi1>
    %96 = vector.broadcast %cst_47 : f32 to vector<64x256xf32>
    %97 = arith.select %95, %93, %96 : vector<64x256xi1>, vector<64x256xf32>
    %98 = arith.addf %92, %97 : vector<64x256xf32>
    %c56_i32_48 = arith.constant 56 : i32
    %99 = tpu.dynamic_rotate %89 by %c56_i32_48 dim 0 : vector<64x256xf32>, i32 -> vector<64x256xf32>
    %cst_49 = arith.constant 0.000000e+00 : f32
    %100 = vector.shape_cast %42 : vector<64x1xi1> to vector<64x1xi1>
    %101 = vector.broadcast %100 : vector<64x1xi1> to vector<64x256xi1>
    %102 = vector.broadcast %cst_49 : f32 to vector<64x256xf32>
    %103 = arith.select %101, %99, %102 : vector<64x256xi1>, vector<64x256xf32>
    %104 = arith.addf %98, %103 : vector<64x256xf32>
    %cst_50 = arith.constant 0.000000e+00 : f32
    %105 = vector.broadcast %cst_50 : f32 to vector<64x256xf32>
    %106 = arith.maximumf %104, %105 : vector<64x256xf32>
    %107 = arith.truncf %106 : vector<64x256xf32> to vector<64x256xbf16>
    %c0_51 = arith.constant 0 : index
    %c0_52 = arith.constant 0 : index
    %108 = vector.load %arg8[%c0_51, %c0_52] : memref<192x128xbf16, #tpu.memory_space<vmem>>, vector<192x128xbf16>
    %cst_53 = arith.constant dense<0.000000e+00> : vector<64x128xf32>
    %109 = tpu.matmul %51, %108, %cst_53 {dimension_numbers = #tpu.dot_dimension_numbers<[1], [0], [0], [1], [0, 0, 1, 1], [], []>} : vector<64x192xbf16>, vector<192x128xbf16>, vector<64x128xf32> -> vector<64x128xf32>
    %c0_54 = arith.constant 0 : index
    %c0_55 = arith.constant 0 : index
    %110 = vector.load %arg9[%c0_54, %c0_55] : memref<256x128xbf16, #tpu.memory_space<vmem>>, vector<256x128xbf16>
    %cst_56 = arith.constant dense<0.000000e+00> : vector<64x128xf32>
    %111 = tpu.matmul %107, %110, %cst_56 {dimension_numbers = #tpu.dot_dimension_numbers<[1], [0], [0], [1], [0, 0, 1, 1], [], []>} : vector<64x256xbf16>, vector<256x128xbf16>, vector<64x128xf32> -> vector<64x128xf32>
    %112 = arith.addf %109, %111 : vector<64x128xf32>
    %c0_57 = arith.constant 0 : index
    %c0_58 = arith.constant 0 : index
    %113 = vector.load %arg10[%c0_57, %c0_58] : memref<1x128xf32, #tpu.memory_space<vmem>>, vector<1x128xf32>
    %114 = vector.broadcast %113 : vector<1x128xf32> to vector<64x128xf32>
    %115 = arith.addf %112, %114 : vector<64x128xf32>
    %cst_59 = arith.constant 2.000000e-01 : f32
    %116 = vector.broadcast %cst_59 : f32 to vector<64x128xf32>
    %117 = arith.mulf %115, %116 : vector<64x128xf32>
    %118 = arith.addf %117, %1 : vector<64x128xf32>
    %cst_60 = arith.constant 0.000000e+00 : f32
    %119 = vector.broadcast %cst_60 : f32 to vector<64x128xf32>
    %120 = arith.maximumf %118, %119 : vector<64x128xf32>
    %121 = arith.truncf %120 : vector<64x128xf32> to vector<64x128xbf16>
    %c0_61 = arith.constant 0 : index
    %c0_62 = arith.constant 0 : index
    %122 = vector.load %arg11[%c0_61, %c0_62] : memref<64x128xbf16, #tpu.memory_space<vmem>>, vector<64x128xbf16>
    tpu.vector_store %arg11[%c0_61, %c0_62], %121 {strides = array<i32>} : memref<64x128xbf16, #tpu.memory_space<vmem>>, vector<64x128xbf16>,
    return
  }
  func.func @transform_0(%arg0: i32) -> (i32, i32) {
    %c0_i32 = arith.constant 0 : i32
    %c0_i32_0 = arith.constant 0 : i32
    return %arg0, %c0_i32 : i32, i32
  }
  func.func @transform_1(%arg0: i32) -> (i32, i32) {
    %c0_i32 = arith.constant 0 : i32
    %c0_i32_0 = arith.constant 0 : i32
    %c0_i32_1 = arith.constant 0 : i32
    return %c0_i32, %c0_i32_0 : i32, i32
  }
  func.func @transform_2(%arg0: i32) -> (i32, i32) {
    %c0_i32 = arith.constant 0 : i32
    %c0_i32_0 = arith.constant 0 : i32
    %c0_i32_1 = arith.constant 0 : i32
    return %c0_i32, %c0_i32_0 : i32, i32
  }
  func.func @transform_3(%arg0: i32) -> (i32, i32, i32) {
    %c0_i32 = arith.constant 0 : i32
    %c0_i32_0 = arith.constant 0 : i32
    %c0_i32_1 = arith.constant 0 : i32
    %c0_i32_2 = arith.constant 0 : i32
    return %c0_i32, %c0_i32_0, %c0_i32_1 : i32, i32, i32
  }
  func.func @transform_4(%arg0: i32) -> (i32, i32) {
    %c0_i32 = arith.constant 0 : i32
    %c0_i32_0 = arith.constant 0 : i32
    %c0_i32_1 = arith.constant 0 : i32
    return %c0_i32, %c0_i32_0 : i32, i32
  }
  func.func @transform_5(%arg0: i32) -> (i32, i32, i32) {
    %c0_i32 = arith.constant 0 : i32
    %c0_i32_0 = arith.constant 0 : i32
    %c0_i32_1 = arith.constant 0 : i32
    %c0_i32_2 = arith.constant 0 : i32
    return %c0_i32, %c0_i32_0, %c0_i32_1 : i32, i32, i32
  }
  func.func @transform_6(%arg0: i32) -> (i32, i32) {
    %c0_i32 = arith.constant 0 : i32
    %c0_i32_0 = arith.constant 0 : i32
    %c0_i32_1 = arith.constant 0 : i32
    return %c0_i32, %c0_i32_0 : i32, i32
  }
  func.func @transform_7(%arg0: i32) -> (i32, i32) {
    %c0_i32 = arith.constant 0 : i32
    %c0_i32_0 = arith.constant 0 : i32
    %c0_i32_1 = arith.constant 0 : i32
    return %c0_i32, %c0_i32_0 : i32, i32
  }
  func.func @transform_8(%arg0: i32) -> (i32, i32) {
    %c0_i32 = arith.constant 0 : i32
    %c0_i32_0 = arith.constant 0 : i32
    %c0_i32_1 = arith.constant 0 : i32
    return %c0_i32, %c0_i32_0 : i32, i32
  }
  func.func @transform_9(%arg0: i32) -> (i32, i32) {
    %c0_i32 = arith.constant 0 : i32
    %c0_i32_0 = arith.constant 0 : i32
    %c0_i32_1 = arith.constant 0 : i32
    return %c0_i32, %c0_i32_0 : i32, i32
  }
  func.func @transform_10(%arg0: i32) -> (i32, i32) {
    %c0_i32 = arith.constant 0 : i32
    %c0_i32_0 = arith.constant 0 : i32
    return %arg0, %c0_i32 : i32, i32
  }
}

</mosaic_0001>

<bundles_post_ra>
// kernel: tpu_custom_call.1
= control target key start
LH: loop header
LB: loop body
LE: loop exit
PB: predicated region body
PF: predicated region fallthrough
CT: control target
= control target key end

     0   :  { %s5431_s0 = inlined_call_operand.hbm [shape: bf16[128,128], index: 0, kind: input, shape index: {}]   ;;  %s5432_s1 = inlined_call_operand.hbm [shape: bf16[128,384], index: 1, kind: input, shape index: {}]   ;;  %s5433_s2 = inlined_call_operand.vmem [shape: f32[1,384], index: 2, kind: input, shape index: {}]   ;;  %s5434_s3 = inlined_call_operand.hbm [shape: bf16[3,192,224], index: 3, kind: input, shape index: {}]   ;;  %s5435_s4 = inlined_call_operand.vmem [shape: f32[1,224], index: 4, kind: input, shape index: {}]   ;;  %s5436_s5 = inlined_call_operand.hbm [shape: bf16[3,224,256], index: 5, kind: input, shape index: {}]   ;;  %s5437_s6 = inlined_call_operand.vmem [shape: f32[1,256], index: 6, kind: input, shape index: {}]   ;;  %s5438_s7 = inlined_call_operand.hbm [shape: bf16[192,128], index: 7, kind: input, shape index: {}]   ;;  %s5439_s8 = inlined_call_operand.hbm [shape: bf16[256,128], index: 8, kind: input, shape index: {}]   ;;  %s5440_s9 = inlined_call_operand.vmem [shape: f32[1,128], index: 9, kind: input, shape index: {}]   ;;  %s5441_s10 = inlined_call_operand.hbm [shape: bf16[128,128], index: 10, kind: output, shape index: {}]  }
   0x1   :  { %5458 = sst [smem:[#allocation23_spill]] %s5432_s1 }
   0x2   :  { %5459 = sst [smem:[#allocation24_spill]] %s5434_s3 }
   0x3   :  { %5460 = sst [smem:[#allocation25_spill]] %s5436_s5 }
   0x4   :  { %5461 = sst [smem:[#allocation26_spill]] %s5438_s7 }
   0x5   :  { %15 = vsyncpa [#allocation3], 0 }
   0x6   :  { %17 = vsyncpa [#allocation3 + $0x1], 0 }
   0x7   :  { %18 = vsyncpa [#allocation6], 0 }
   0x8   :  { %19 = vsyncpa [#allocation9], 0 }
   0x9   :  { %20 = vsyncpa [#allocation12], 0 }
   0xa   :  { %21 = vsyncpa [#allocation4], 0 }
   0xb   :  { %23 = vsyncpa [#allocation4 + $0x1], 0  ;;  %s4526_s13 = smov 0   ;;  %s4528_s14 = smov 0  }
   0xc   :  { %s4530_s15 = smov 0   ;;  %s4532_s16 = smov 0  }
   0xd LB: > { %s4455_s17 = smov [#allocation5]   ;;  %s4547_s19 = sadd.s32 4294967295, %s4453_s16   ;;  %s4453_s16 = sphi %s4532_s16, %s5549_s16   ;;  %s4449_s15 = sphi %s4530_s15, %s5548_s15   ;;  %s4445_s14 = sphi %s4528_s14, %s5547_s14   ;;  %s4441_s13 = sphi %s4526_s13, %s5546_s13  }
   0xe   : > { %s287_s18 = sshll.u32 %s4455_s17, 4  ;;  %p3426_p0 = scmp.ge.s32.totalorder %s4453_s16, 1  ;;  %s288_s18 = int_to_ptr.vmem [resolvable:$true] %s287_s18 }
   0xf   : > { %p5444_p1 = scmp.eq.s32.totalorder %s4547_s19, 0  ;;  %p275_p2 = scmp.lt.s32.totalorder %s4453_s16, 3 }
  0x10   : > { %s4456_s22 = smov [#allocation8]   ;;  %s4457_s24 = smov [#allocation7]  }
  0x11   : > { %p4552_p3 = pnand %p3426_p0, %p275_p2  ;;  %s319_s23 = sshll.u32 %s4456_s22, 4  ;;  %s4565_s23 = int_to_ptr.vmem [resolvable:$true] %s319_s23 }
  0x12   : > { %s4567_s25 = sshll.u32 %s4457_s24, 4  ;;  %s4230_s27 = scalar_lea.vmem %s288_s18, 3072  ;;  %s304_s25 = int_to_ptr.vmem [resolvable:$true] %s4567_s25 }
  0x13   : > { %s5462_s20 = scalar_select %p4552_p3, 1, 0 }
  0x14   : > { %p3831_p5 = pneg %p4552_p3  ;;  %p4231_p8 = scmp.ne.s32.totalorder %s288_s18, %s4230_s27 }
  0x15   : > { %p4238_p11 = scmp.lt.s32.totalorder %s288_s18, %s288_s18  ;;  %p4239_p12 = scmp.lt.s32.totalorder %s4230_s27, %s4230_s27 }
  0x16   : > { %p4561_p6 = pnand %p3831_p5, %p5444_p1 }
  0x17   : > { %p4240_p13 = por %p4239_p12, %p4238_p11 }
  0x18   : > { %p4571_p7 = pneg %p4561_p6 }
  0x1a   : > { %p4233_p9 = pnand %p4231_p8, %p4571_p7 }
  0x1c   : > { %p4234_p10 = pneg %p4233_p9 }
  0x1e   : > { %p4241_p0 = pnand %p4240_p13, %p4234_p10 }
  0x20   : > { %4244 = shalt.err (!%p4241_p0)
}
  0x21   : > { %s4458_s28 = smov 192   ;;  %s4459_s29 = smov 12  }
  0x22   : > { %s5465_s1 = sld [smem:[#allocation23_spill]]  ;;  %s4256_s12 = scalar_lea.vmem %s4565_s23, 10752 }
  0x23   : > { %p4257_p2 = scmp.ne.s32.totalorder %s4565_s23, %s4256_s12  ;;  %p4264_p9 = scmp.lt.s32.totalorder %s4565_s23, %s4565_s23 }
  0x24   : > { %p4265_p10 = scmp.lt.s32.totalorder %s4256_s12, %s4256_s12 }
  0x25   : > { %p4259_p5 = pnand %p4257_p2, %p4571_p7 }
  0x26   : > { %p4266_p11 = por %p4265_p10, %p4264_p9 }
  0x27   : > { %p4260_p8 = pneg %p4259_p5 }
  0x28   : > { %3834 = dma.hbm_to_vmem [thread:$0]  (!%p4561_p6), %s5465_s1, 3072, %s288_s18, [#allocation6], %s4458_s28, %s4458_s28, %s4459_s29  }
  0x29   : > { %p4267_p12 = pnand %p4266_p11, %p4260_p8 }
  0x2b   : > { %4270 = shalt.err (!%p4267_p12)
}
  0x2c   : > { %s4460_s17 = smov 128   ;;  %s4461_s22 = smov 8  }
  0x2d   : > { %s5466_s5 = sld [smem:[#allocation25_spill]]  ;;  %s4282_s27 = scalar_lea.vmem %s304_s25, 9216 }
  0x2e   : > { %p4283_p13 = scmp.ne.s32.totalorder %s304_s25, %s4282_s27  ;;  %p4290_p5 = scmp.lt.s32.totalorder %s304_s25, %s304_s25 }
  0x2f   : > { %p4291_p8 = scmp.lt.s32.totalorder %s4282_s27, %s4282_s27 }
  0x30   : > { %p4285_p0 = pnand %p4283_p13, %p4571_p7 }
  0x31   : > { %p4292_p9 = por %p4291_p8, %p4290_p5 }
  0x32   : > { %p4286_p2 = pneg %p4285_p0 }
  0x33   : > { %3840 = dma.hbm_to_vmem [thread:$0]  (!%p4561_p6), %s5466_s5, 10752, %s4565_s23, [#allocation9], %s4460_s17, %s4460_s17, %s4461_s22  }
  0x34   : > { %p4293_p10 = pnand %p4292_p9, %p4286_p2 }
  0x36   : > { %4296 = shalt.err (!%p4293_p10)
}
  0x37   : > { %s5467_s3 = sld [smem:[#allocation24_spill]]  ;;  %s4462_s30 = smov [#allocation10]  }
  0x38   : > { %s335_s23 = sshll.u32 %s4462_s30, 4  ;;  %s336_s23 = int_to_ptr.vmem [resolvable:$true] %s335_s23 }
  0x39   : > { %s4308_s11 = scalar_lea.vmem %s336_s23, 1536  ;;  %p4316_p0 = scmp.lt.s32.totalorder %s336_s23, %s336_s23 }
  0x3a   : > { %p4309_p11 = scmp.ne.s32.totalorder %s336_s23, %s4308_s11  ;;  %p4317_p4 = scmp.lt.s32.totalorder %s4308_s11, %s4308_s11 }
  0x3c   : > { %p4311_p12 = pnand %p4309_p11, %p4571_p7  ;;  %p4318_p5 = por %p4317_p4, %p4316_p0 }
  0x3d   : > { %3837 = dma.hbm_to_vmem [thread:$0]  (!%p4561_p6), %s5467_s3, 9216, %s304_s25, [#allocation6], %s4460_s17, %s4460_s17, %s4461_s22  }
  0x3e   : > { %p4312_p13 = pneg %p4311_p12 }
  0x40   : > { %p4319_p2 = pnand %p4318_p5, %p4312_p13 }
  0x42   : > { %4322 = shalt.err (!%p4319_p2)
}
  0x43   : > { %s5442_s12 = smov 64   ;;  %s5443_s24 = smov 4  }
  0x44   : > { %s5468_s7 = sld [smem:[#allocation26_spill]]  ;;  %s4465_s22 = smov [#allocation11]  }
  0x45   : > { %s348_s18 = sshll.u32 %s4465_s22, 4  ;;  %s349_s18 = int_to_ptr.vmem [resolvable:$true] %s348_s18 }
  0x46   : > { %s4334_s27 = scalar_lea.vmem %s349_s18, 2048  ;;  %p4342_p10 = scmp.lt.s32.totalorder %s349_s18, %s349_s18 }
  0x47   : > { %p4335_p8 = scmp.ne.s32.totalorder %s349_s18, %s4334_s27  ;;  %p4343_p11 = scmp.lt.s32.totalorder %s4334_s27, %s4334_s27 }
  0x49   : > { %p4337_p4 = pnand %p4335_p8, %p4571_p7  ;;  %p4344_p12 = por %p4343_p11, %p4342_p10 }
  0x4a   : > { %3843 = dma.hbm_to_vmem [thread:$0]  (!%p4561_p6), %s5468_s7, 1536, %s336_s23, [#allocation9], %s5442_s12, %s5442_s12, %s5443_s24  }
  0x4b   : > { %p4338_p9 = pneg %p4337_p4 }
  0x4d   : > { %p4345_p13 = pnand %p4344_p12, %p4338_p9 }
  0x4f   : > { %4348 = shalt.err (!%p4345_p13)
}
  0x50   : > { %3846 = dma.hbm_to_vmem [thread:$0]  (!%p4561_p6), %s5439_s8, 2048, %s349_s18, [#allocation12], %s5442_s12, %s5442_s12, %s5443_s24  }
  0x51   : > { %s3425_s21 = sadd.s32 4294967294, %s4453_s16   ;;  %s4624_s26 = sadd.s32 1, %s4453_s16  }
  0x52   : > { %s36_s30 = sadd.s32 1, %s4449_s15  ;;  %s33_s23 = ssub.s32 %s4453_s16, %s4624_s26 }
  0x53   : > { %p43_p7 = scmp.ne.s32.totalorder %s4449_s15, %s4445_s14  ;;  %p34_p0 = scmp.eq.s32.totalorder %s33_s23, 0 }
  0x54   : > { %p44_p5 = scmp.eq.s32.totalorder %s4453_s16, 0  ;;  %p49_p2 = scmp.ne.s32.totalorder %s4445_s14, %s4441_s13 }
  0x55   : > { %p262_p8 = scmp.eq.s32.totalorder %s4547_s19, 1  ;;  %p268_p10 = scmp.eq.s32.totalorder %s3425_s21, 1 }
  0x56   : > { %s4636_s11 = scalar_select %p34_p0, %s4449_s15, %s36_s30  }
  0x57   : > { %p45_p4 = por %p44_p5, %p43_p7  ;;  %p4640_p9 = por %p5444_p1, %p49_p2 }
  0x58   : > { %p4644_p6 = por %p262_p8, %p43_p7  ;;  %p3860_p11 = scmp.lt.s32.totalorder %s4453_s16, 2 }
  0x59   : > { %s5469_s25 = scalar_select %p4640_p9, 1, 0 }
  0x5a   : > { %s5470_s17 = scalar_select %p4644_p6, 1, 0 }
  0x5b   : > { %s365_s22 = sand.u32 1, %s4449_s15   ;;  %p4650_p12 = por %p268_p10, %p49_p2 }
  0x5c   : > { %s3433_s27 = sshll.u32 %s365_s22, 5  ;;  %s3698_s28 = sshll.u32 %s4453_s16, 9 }
  0x5d   : > { %s5471_s18 = scalar_select %p4650_p12, 1, 0 }
  0x5e   : > { %s4658_s23 = scalar_lea.hbm %s5431_s0, %s3698_s28  ;;  %s369_s12 = scalar_lea.vmem [#allocation2], %s3433_s27 }
  0x5f   : > { %s376_s24 = sshll.u32 %s369_s12, 4  ;;  %p4660_p13 = pnand %p3860_p11, %p45_p4  ;;  %s4664_s24 = int_to_ptr.vmem [resolvable:$true] %s376_s24 }
  0x60   : > { %s4666_s1 = scalar_lea.sflag [#allocation3], %s365_s22  ;;  %s4349_s3 = scalar_lea.hbm %s4658_s23, 512 }
  0x61   : > { %p4350_p7 = scmp.ne.s32.totalorder %s4658_s23, %s4349_s3  ;;  %p4351_p0 = pneg %p4660_p13 }
  0x62   : > { %s4354_s27 = scalar_lea.hbm %s5431_s0, 1024  ;;  %p4355_p8 = scmp.lt.s32.totalorder %s4658_s23, %s5431_s0 }
  0x63   : > { %p4352_p5 = pnand %p4351_p0, %p4350_p7  ;;  %p4356_p4 = scmp.lt.s32.totalorder %s4354_s27, %s4349_s3 }
  0x65   : > { %p4353_p2 = pneg %p4352_p5  ;;  %p4357_p10 = por %p4356_p4, %p4355_p8 }
  0x67   : > { %p4358_p11 = pnand %p4357_p10, %p4353_p2 }
  0x69   : > { %4361 = shalt.err (!%p4358_p11)
}
  0x6a   : > { %s4362_s22 = scalar_lea.vmem %s4664_s24, 512  ;;  %s4466_s5 = smov [#allocation2]  }
  0x6b   : > { %p4363_p1 = scmp.ne.s32.totalorder %s4664_s24, %s4362_s22  ;;  %s4367_s7 = sshll.u32 %s4466_s5, 4  ;;  %s4368_s7 = int_to_ptr.vmem [resolvable:$false] %s4367_s7 }
  0x6c   : > { %s4369_s28 = scalar_lea.vmem %s4368_s7, 1024  ;;  %p4370_p5 = scmp.lt.s32.totalorder %s4664_s24, %s4368_s7 }
  0x6d   : > { %p4365_p12 = pnand %p4363_p1, %p4351_p0  ;;  %p4371_p6 = scmp.lt.s32.totalorder %s4369_s28, %s4362_s22 }
  0x6f   : > { %p4366_p7 = pneg %p4365_p12  ;;  %p4372_p9 = por %p4371_p6, %p4370_p5 }
  0x71   : > { %p4373_p3 = pnand %p4372_p9, %p4366_p7 }
  0x73   : > { %4376 = shalt.err (!%p4373_p3)
}
  0x74   : > { %s5473_s3 = smov 4   ;;  %s5474_s29 = smov 64  }
  0x75   : > { %3850 = dma.hbm_to_vmem [thread:$0]  (!%p4660_p13), %s4658_s23, 512, %s4664_s24, %s4666_s1, %s5474_s29, %s5474_s29, %s5473_s3  }
  0x76   : > { %p5475_p1 = scmp.ne.s32.totalorder %s5462_s20, 0 }
  0x78   : > { %388 = sbr.rel (%p5475_p1) target bundleno = 1274 (0x4fa), region = 60 }
  0x7d   : > { %s4693_s5 = sand.u32 1, %s4445_s14   ;;  %p5476_p3 = scmp.ne.s32.totalorder %s5469_s25, 0 }
  0x7e   : > { %s3437_s7 = sshll.u32 %s4693_s5, 5  ;;  %s391_s27 = scalar_lea.sflag [#allocation3], %s4693_s5 }
  0x7f   : > { %s4699_s21 = scalar_lea.vmem [#allocation2], %s3437_s7 }
  0x80   : > { %4420 = dma.done.wait (%p5476_p3), %s391_s27, 512  }
  0x81   : > { %4422 = vsyncadd (%p5476_p3), %s391_s27, 4294966784  ;;  %p5477_p9 = scmp.eq.s32.totalorder %s4547_s19, 0 }
  0x83   : > { %4424 = dma.done.wait (%p5477_p9), [#allocation6], 12288   ;;  %p5478_p6 = pmov %p5477_p9 }
  0x85   : > { %4426 = vsyncadd (%p5478_p6), [#allocation6], 4294955008  ;;  %p5479_p12 = pmov %p5478_p6 }
  0x86   : > { %p5480_p13 = pmov %p5478_p6 }
  0x87   : > { %4428 = dma.done.wait (%p5479_p12), [#allocation9], 12288  }
  0x88   : > { %4430 = vsyncadd (%p5480_p13), [#allocation9], 4294955008  ;;  %p5481_p0 = pmov %p5478_p6 }
  0x8a   : > { %4432 = dma.done.wait (%p5481_p0), [#allocation12], 2048   ;;  %p5482_p2 = pmov %p5481_p0 }
  0x8b   : > { %v5448_v0 = vmov 0   ;;  %v3913_v1 = vld [vmem:[#allocation5 + $0xac] ss:$12 sps:$4 sm:$0xff]   ;;  %v3915_v2 = vld [vmem:[#allocation5 + $0xb0] ss:$12 sps:$4 sm:$0xff]   ;;  %v454_v18 = vld [vmem:[%s4699_s21] sm:$0xff]  }
  0x8c   : > { %4434 = vsyncadd (%p5482_p2), [#allocation12], 4294965248  ;;  %936 = vmatprep.mubr.bf16.mxu0 %v5448_v0  ;;  %904 = vmatprep.subr.bf16.mxu0 %v3913_v1  ;;  %v3916_v3 = vld [vmem:[#allocation5 + $0xa8] ss:$12 sps:$4 sm:$0xff]   ;;  %v3919_v5 = vld [vmem:[#allocation5 + $0x98] ss:$12 sps:$4 sm:$0xff]  }
  0x8d   : > { %3783 = vmatprep.subr.bf16.mxu1 %v3915_v2  ;;  %v3917_v4 = vld [vmem:[#allocation5 + $0x94] ss:$12 sps:$4 sm:$0xff]   ;;  %905 = vmatpush1.bf16.msra.mxu0 %v3916_v3  ;;  %v3920_v6 = vld [vmem:[#allocation5 + $0x90] ss:$12 sps:$4 sm:$0xff]   ;;  %v3924_v9 = vld [vmem:[#allocation5 + $0x78] ss:$12 sps:$4 sm:$0xff]  }
  0x8e   : > { %3784 = vmatpush3.bf16.msra.mxu1 %v3915_v2  ;;  %906 = vmatprep.subr.bf16.mxu0 %v3917_v4  ;;  %v3921_v7 = vld [vmem:[#allocation5 + $0x7c] ss:$12 sps:$4 sm:$0xff]   ;;  %v3923_v8 = vld [vmem:[#allocation5 + $0x80] ss:$12 sps:$4 sm:$0xff]   ;;  %v3925_v10 = vld [vmem:[#allocation5 + $0x64] ss:$12 sps:$4 sm:$0xff]  }
  0x8f   : > { %3785 = vmatprep.subr.bf16.mxu1 %v3919_v5  ;;  %v3927_v11 = vld [vmem:[#allocation5 + $0x68] ss:$12 sps:$4 sm:$0xff]   ;;  %v3928_v12 = vld [vmem:[#allocation5 + $0x60] ss:$12 sps:$4 sm:$0xff]   ;;  %v3931_v14 = vld [vmem:[#allocation5 + $0x50] ss:$12 sps:$4 sm:$0xff]   ;;  %3799 = vmatprep.mubr.bf16.mxu1 %v454_v18 }
  0x90   : > { %v3929_v13 = vld [vmem:[#allocation5 + $0x4c] ss:$12 sps:$4 sm:$0xff]   ;;  %v3932_v15 = vld [vmem:[#allocation5 + $0x48] ss:$12 sps:$4 sm:$0xff]   ;;  %v3936_v19 = vld [vmem:[#allocation5 + $0x30] ss:$12 sps:$4 sm:$0xff]  }
  0x91   : > { %907 = vmatpush1.bf16.msra.mxu0 %v3920_v6  ;;  %v3933_v16 = vld [vmem:[#allocation5 + $0x34] ss:$12 sps:$4 sm:$0xff]   ;;  %v3935_v17 = vld [vmem:[#allocation5 + $0x38] ss:$12 sps:$4 sm:$0xff]   ;;  %v3937_v20 = vld [vmem:[#allocation5 + $0x1c] ss:$12 sps:$4 sm:$0xff]  }
  0x92   : > { %3786 = vmatpush3.bf16.msra.mxu1 %v3919_v5  ;;  %908 = vmatprep.subr.bf16.mxu0 %v3921_v7  ;;  %v3939_v21 = vld [vmem:[#allocation5 + $0x20] ss:$12 sps:$4 sm:$0xff]   ;;  %v3940_v22 = vld [vmem:[#allocation5 + $0x18] ss:$12 sps:$4 sm:$0xff]   ;;  %v3943_v24 = vld [vmem:[#allocation5 + $0x8] ss:$12 sps:$4 sm:$0xff]  }
  0x93   : > { %3787 = vmatprep.subr.bf16.mxu1 %v3923_v8  ;;  %v3941_v23 = vld [vmem:[#allocation5 + $0x4] ss:$12 sps:$4 sm:$0xff]   ;;  %v3944_v25 = vld [vmem:[#allocation5] ss:$12 sps:$4 sm:$0xff]   ;;  %v460_v28 = vld [vmem:[%s4699_s21 + $0x18] sm:$0xff]   ;;  %s4468_s24 = smov 64  }
  0x94   : > { %v456_v26 = vld [vmem:[%s4699_s21 + $0x8] sm:$0xff]   ;;  %v458_v27 = vld [vmem:[%s4699_s21 + $0x10] sm:$0xff]   ;;  %vm1126_vm0 = vcmask 523264   ;;  %vm2143_vm13 = vcmask 785408   ;;  %s5365_s3 = scalar_lea.vmem [#allocation13], %s3437_s7  ;;  %s3707_s29 = sshll.u32 %s4547_s19, 9 }
  0x95   : > { %909 = vmatpush1.bf16.msra.mxu0 %v3924_v9  ;;  %v3949_v29 = vld [vmem:[#allocation7 + $0x70] ss:$8 sps:$4 sm:$0xff]   ;;  %v3951_v30 = vld [vmem:[#allocation7 + $0x74] ss:$8 sps:$4 sm:$0xff]   ;;  %v3957_v33 = vld [vmem:[#allocation7 + $0x64] ss:$8 sps:$4 sm:$0xff]   ;;  %s5383_s1 = scalar_lea.hbm %s5441_s10, %s3707_s29 }
  0x96   : > { %3788 = vmatpush3.bf16.msra.mxu1 %v3923_v8  ;;  %910 = vmatprep.subr.bf16.mxu0 %v3925_v10  ;;  %v3952_v31 = vld [vmem:[#allocation7 + $0x1f0] ss:$8 sps:$4 sm:$0xff]   ;;  %v3954_v32 = vld [vmem:[#allocation7 + $0x1f4] ss:$8 sps:$4 sm:$0xff]   ;;  %v3960_v34 = vld [vmem:[#allocation7 + $0x1e4] ss:$8 sps:$4 sm:$0xff]   ;;  %v470_v10 = vlaneseq }
  0x97   : > { %3789 = vmatprep.subr.bf16.mxu1 %v3927_v11  ;;  %v3955_v35 = vld [vmem:[#allocation7 + $0x60] ss:$8 sps:$4 sm:$0xff]   ;;  %v3963_v37 = vld [vmem:[#allocation7 + $0x54] ss:$8 sps:$4 sm:$0xff]   ;;  %v3961_v39 = vld [vmem:[#allocation7 + $0x50] ss:$8 sps:$4 sm:$0xff]  }
  0x98   : > { %v3958_v36 = vld [vmem:[#allocation7 + $0x1e0] ss:$8 sps:$4 sm:$0xff]   ;;  %v3966_v38 = vld [vmem:[#allocation7 + $0x1d4] ss:$8 sps:$4 sm:$0xff]   ;;  %v3964_v40 = vld [vmem:[#allocation7 + $0x1d0] ss:$8 sps:$4 sm:$0xff]  }
  0x99   : > { %911 = vmatpush1.bf16.msra.mxu0 %v3928_v12  ;;  %v3969_v41 = vld [vmem:[#allocation7 + $0x44] ss:$8 sps:$4 sm:$0xff]   ;;  %v3967_v43 = vld [vmem:[#allocation7 + $0x40] ss:$8 sps:$4 sm:$0xff]   ;;  %v3975_v45 = vld [vmem:[#allocation7 + $0x34] ss:$8 sps:$4 sm:$0xff]  }
  0x9a   : > { %3790 = vmatpush3.bf16.msra.mxu1 %v3927_v11  ;;  %912 = vmatprep.subr.bf16.mxu0 %v3929_v13  ;;  %v3972_v42 = vld [vmem:[#allocation7 + $0x1c4] ss:$8 sps:$4 sm:$0xff]   ;;  %v3970_v44 = vld [vmem:[#allocation7 + $0x1c0] ss:$8 sps:$4 sm:$0xff]   ;;  %v3978_v46 = vld [vmem:[#allocation7 + $0x1b4] ss:$8 sps:$4 sm:$0xff]  }
  0x9b   : > { %3791 = vmatprep.subr.bf16.mxu1 %v3931_v14  ;;  %v3973_v47 = vld [vmem:[#allocation7 + $0x30] ss:$8 sps:$4 sm:$0xff]   ;;  %v3981_v49 = vld [vmem:[#allocation7 + $0x24] ss:$8 sps:$4 sm:$0xff]   ;;  %v3979_v51 = vld [vmem:[#allocation7 + $0x20] ss:$8 sps:$4 sm:$0xff]  }
  0x9c   : > { %v3976_v48 = vld [vmem:[#allocation7 + $0x1b0] ss:$8 sps:$4 sm:$0xff]   ;;  %v3984_v50 = vld [vmem:[#allocation7 + $0x1a4] ss:$8 sps:$4 sm:$0xff]   ;;  %v3982_v52 = vld [vmem:[#allocation7 + $0x1a0] ss:$8 sps:$4 sm:$0xff]  }
  0x9d   : > { %913 = vmatpush1.bf16.msra.mxu0 %v3932_v15  ;;  %v3987_v53 = vld [vmem:[#allocation7 + $0x14] ss:$8 sps:$4 sm:$0xff]   ;;  %v3985_v55 = vld [vmem:[#allocation7 + $0x10] ss:$8 sps:$4 sm:$0xff]   ;;  %v3993_v57 = vld [vmem:[#allocation7 + $0x4] ss:$8 sps:$4 sm:$0xff]  }
  0x9e   : > { %3792 = vmatpush3.bf16.msra.mxu1 %v3931_v14  ;;  %914 = vmatprep.subr.bf16.mxu0 %v3933_v16  ;;  %v3990_v54 = vld [vmem:[#allocation7 + $0x194] ss:$8 sps:$4 sm:$0xff]   ;;  %v3988_v56 = vld [vmem:[#allocation7 + $0x190] ss:$8 sps:$4 sm:$0xff]   ;;  %v3996_v58 = vld [vmem:[#allocation7 + $0x184] ss:$8 sps:$4 sm:$0xff]  }
  0x9f   : > { %3793 = vmatprep.subr.bf16.mxu1 %v3935_v17  ;;  %v3991_v59 = vld [vmem:[#allocation7] ss:$8 sps:$4 sm:$0xff]   ;;  %v3999_v61 = vld [vmem:[#allocation7 + $0xb4] ss:$8 sps:$4 sm:$0xff]   ;;  %v3997_v63 = vld [vmem:[#allocation7 + $0xb0] ss:$8 sps:$4 sm:$0xff]  }
  0xa0   : > { %v3994_v60 = vld [vmem:[#allocation7 + $0x180] ss:$8 sps:$4 sm:$0xff]   ;;  %v4002_v62 = vld [vmem:[#allocation7 + $0x234] ss:$8 sps:$4 sm:$0xff]   ;;  %v4000_v1 = vld [vmem:[#allocation7 + $0x230] ss:$8 sps:$4 sm:$0xff]  }
  0xa1   : > { %915 = vmatpush1.bf16.msra.mxu0 %v3936_v19  ;;  %v4005_v2 = vld [vmem:[#allocation7 + $0xa4] ss:$8 sps:$4 sm:$0xff]   ;;  %v4003_v4 = vld [vmem:[#allocation7 + $0xa0] ss:$8 sps:$4 sm:$0xff]   ;;  %v4011_v6 = vld [vmem:[#allocation7 + $0x94] ss:$8 sps:$4 sm:$0xff]  }
  0xa2   : > { %3794 = vmatpush3.bf16.msra.mxu1 %v3935_v17  ;;  %916 = vmatprep.subr.bf16.mxu0 %v3937_v20  ;;  %v4008_v3 = vld [vmem:[#allocation7 + $0x224] ss:$8 sps:$4 sm:$0xff]   ;;  %v4006_v5 = vld [vmem:[#allocation7 + $0x220] ss:$8 sps:$4 sm:$0xff]   ;;  %v4014_v7 = vld [vmem:[#allocation7 + $0x214] ss:$8 sps:$4 sm:$0xff]  }
  0xa3   : > { %3795 = vmatprep.subr.bf16.mxu1 %v3939_v21  ;;  %v4009_v8 = vld [vmem:[#allocation7 + $0x90] ss:$8 sps:$4 sm:$0xff]   ;;  %v4725_v11 = vshrl.u32 %v470_v10, 7  ;;  %v735_v13 = vld [vmem:[%s5433_s2] sm:$0x7]  ;;  %s3304_s7 = sshll.u32 %s5365_s3, 4  ;;  %s5385_s7 = int_to_ptr.vmem [resolvable:$true] %s3304_s7 }
  0xa4   : > { %v4012_v9 = vld [vmem:[#allocation7 + $0x210] ss:$8 sps:$4 sm:$0xff]   ;;  %v4017_v15 = vld [vmem:[#allocation7 + $0x84] ss:$8 sps:$4 sm:$0xff]   ;;  %v4015_v17 = vld [vmem:[#allocation7 + $0x80] ss:$8 sps:$4 sm:$0xff]  }
  0xa5   : > { %917 = vmatpush1.bf16.msra.mxu0 %v3940_v22  ;;  %v4728_v12 = vsub.s32 0, %v4725_v11  ;;  %v4734_v14 = vsub.s32 1, %v4725_v11  ;;  %v4020_v19 = vld [vmem:[#allocation7 + $0x204] ss:$8 sps:$4 sm:$0xff]   ;;  %v747_v22 = vsub.s32 2, %v4725_v11  ;;  %vm1886_vm1 = vcmp.lt.s32.totalorder %v4725_v11, 7 }
  0xa6   : > { %3796 = vmatpush3.bf16.msra.mxu1 %v3939_v21  ;;  %918 = vmatprep.subr.bf16.mxu0 %v3941_v23  ;;  %vm1805_vm3 = vcmp.lt.s32.totalorder %v4725_v11, 1  ;;  %s3291_s20 = scalar_lea.sflag [#allocation4], %s4693_s5  ;;  %s4377_s25 = scalar_lea.vmem %s5385_s7, 512 }
  0xa7   : > { %3797 = vmatprep.subr.bf16.mxu1 %v3943_v24  ;;  %5483 = vst [vmem:[#allocation19_spill] sm:$0xff] %v4728_v12  ;;  %5484 = vst [vmem:[#allocation20_spill] sm:$0xff] %v4734_v14  ;;  %v4737_v16 = vrot.slane %v735_v13, %v4728_v12  ;;  %v4741_v23 = vrot.slane %v735_v13, %v4734_v14  ;;  %p4378_p8 = scmp.ne.s32.totalorder %s5385_s7, %s4377_s25  ;;  %p5543_p4 = scmp.ne.s32.totalorder %s5470_s17, 0 }
  0xa8   : > { %s4469_s19 = smov [#allocation13]  }
  0xa9   : > { %919 = vmatpush1.bf16.msra.mxu0 %v3944_v25  ;;  %p4379_p10 = pnand %p4378_p8, %p5543_p4  ;;  %s4381_s23 = sshll.u32 %s4469_s19, 4  ;;  %s4382_s23 = int_to_ptr.vmem [resolvable:$false] %s4381_s23 }
  0xaa   : > { %3798 = vmatpush3.bf16.msra.mxu1 %v3943_v24  ;;  %1268 = vmatprep.subr.bf16.mxu0 %v3951_v30  ;;  %v748_v30 = vrot.slane %v735_v13, %v747_v22  ;;  %s4383_s12 = scalar_lea.vmem %s4382_s23, 1024  ;;  %p4384_p7 = scmp.lt.s32.totalorder %s5385_s7, %s4382_s23 }
  0xab   : > { %1511 = vmatprep.subr.bf16.mxu1 %v3954_v32  ;;  %p4380_p11 = pneg %p4379_p10  ;;  %p4385_p5 = scmp.lt.s32.totalorder %s4383_s12, %s4377_s25 }
  0xac   : > { %937 = vmatmul.mubr.bf16.vlgmr.msra.gmra.mxu0 %v454_v18  ;;  %v4018_v18 = vld [vmem:[#allocation7 + $0x200] ss:$8 sps:$4 sm:$0xff]  }
  0xad   : > { %3800 = vmatmul.mubr.bf16.vlgmr.msra.gmra.mxu1 %v456_v26  ;;  %946 = vmatprep.mubr.bf16.mxu0 %v5448_v0  ;;  %p4386_p1 = por %p4385_p5, %p4384_p7 }
  0xae   : > { %3803 = vmatprep.mubr.bf16.mxu1 %v458_v27  ;;  %1269 = vmatpush1.bf16.msra.mxu0 %v3949_v29 }
  0xaf   : > { %1512 = vmatpush1.bf16.msra.mxu1 %v3952_v31  ;;  %1270 = vmatprep.subr.bf16.mxu0 %v3957_v33  ;;  %p4387_p3 = pnand %p4386_p1, %p4380_p11 }
  0xb0   : > { %1513 = vmatprep.subr.bf16.mxu1 %v3960_v34 }
  0xb2   : > { %1271 = vmatpush1.bf16.msra.mxu0 %v3955_v35 }
  0xb3   : > { %1514 = vmatpush1.bf16.msra.mxu1 %v3958_v36  ;;  %1272 = vmatprep.subr.bf16.mxu0 %v3963_v37 }
  0xb4   : > { %947 = vmatmul.mubr.bf16.gmra.mxu0 %v456_v26  ;;  %1515 = vmatprep.subr.bf16.mxu1 %v3966_v38  ;;  %v4023_v26 = vld [vmem:[#allocation7 + $0x134] ss:$8 sps:$4 sm:$0xff]  }
  0xb5   : > { %3804 = vmatmul.mubr.bf16.gmra.mxu1 %v460_v28  ;;  %956 = vmatprep.mubr.bf16.mxu0 %v5448_v0 }
  0xb6   : > { %1273 = vmatpush1.bf16.msra.mxu0 %v3961_v39 }
  0xb7   : > { %1516 = vmatpush1.bf16.msra.mxu1 %v3964_v40  ;;  %1274 = vmatprep.subr.bf16.mxu0 %v3969_v41 }
  0xb8   : > { %1517 = vmatprep.subr.bf16.mxu1 %v3972_v42 }
  0xba   : > { %1275 = vmatpush1.bf16.msra.mxu0 %v3967_v43 }
  0xbb   : > { %1518 = vmatpush1.bf16.msra.mxu1 %v3970_v44  ;;  %1276 = vmatprep.subr.bf16.mxu0 %v3975_v45 }
  0xbc   : > { %957 = vmatmul.mubr.bf16.gmra.mxu0 %v458_v27  ;;  %1519 = vmatprep.subr.bf16.mxu1 %v3978_v46 }
  0xbd   : > { %966 = vmatprep.mubr.bf16.mxu0 %v5448_v0 }
  0xbe   : > { %1277 = vmatpush1.bf16.msra.mxu0 %v3973_v47 }
  0xbf   : > { %1520 = vmatpush1.bf16.msra.mxu1 %v3976_v48  ;;  %1278 = vmatprep.subr.bf16.mxu0 %v3981_v49 }
  0xc0   : > { %1521 = vmatprep.subr.bf16.mxu1 %v3984_v50 }
  0xc2   : > { %1279 = vmatpush1.bf16.msra.mxu0 %v3979_v51 }
  0xc3   : > { %1522 = vmatpush1.bf16.msra.mxu1 %v3982_v52  ;;  %1280 = vmatprep.subr.bf16.mxu0 %v3987_v53 }
  0xc4   : > { %967 = vmatmul.mubr.bf16.gmra.mxu0 %v460_v28  ;;  %1523 = vmatprep.subr.bf16.mxu1 %v3990_v54 }
  0xc6   : > { %1281 = vmatpush1.bf16.msra.mxu0 %v3985_v55 }
  0xc7   : > { %1524 = vmatpush1.bf16.msra.mxu1 %v3988_v56  ;;  %1282 = vmatprep.subr.bf16.mxu0 %v3993_v57 }
  0xc8   : > { %1525 = vmatprep.subr.bf16.mxu1 %v3996_v58 }
  0xca   : > { %1283 = vmatpush1.bf16.msra.mxu0 %v3991_v59 }
  0xcb   : > { %1526 = vmatpush1.bf16.msra.mxu1 %v3994_v60  ;;  %1292 = vmatprep.subr.bf16.mxu0 %v3999_v61 }
  0xcc   : > { %1535 = vmatprep.subr.bf16.mxu1 %v4002_v62 }
  0xce   : > { %1293 = vmatpush2.bf16.msra.mxu0 %v3997_v63 }
  0xcf   : > { %1536 = vmatpush2.bf16.msra.mxu1 %v4000_v1  ;;  %1294 = vmatprep.subr.bf16.mxu0 %v4005_v2 }
  0xd0   : > { %1537 = vmatprep.subr.bf16.mxu1 %v4008_v3 }
  0xd2   : > { %1295 = vmatpush2.bf16.msra.mxu0 %v4003_v4 }
  0xd3   : > { %1538 = vmatpush2.bf16.msra.mxu1 %v4006_v5  ;;  %1296 = vmatprep.subr.bf16.mxu0 %v4011_v6 }
  0xd4   : > { %1539 = vmatprep.subr.bf16.mxu1 %v4014_v7 }
  0xd6   : > { %1297 = vmatpush2.bf16.msra.mxu0 %v4009_v8 }
  0xd7   : > { %1540 = vmatpush2.bf16.msra.mxu1 %v4012_v9  ;;  %1298 = vmatprep.subr.bf16.mxu0 %v4017_v15 }
  0xd8   : > { %1541 = vmatprep.subr.bf16.mxu1 %v4020_v19 }
  0xda   : > { %1299 = vmatpush2.bf16.msra.mxu0 %v4015_v17 }
  0xdb   : > { %1542 = vmatpush2.bf16.msra.mxu1 %v4018_v18  ;;  %1716 = vmatprep.subr.bf16.mxu0 %v4023_v26 }
 0x16c   : > { %v938_v20 = vpop.f32.mrf.mxu0 }
 0x16d   : > { %v3801_v21 = vpop.f32.mrf.mxu1  ;;  %v939_v27 = vadd.f32 %v938_v20, %v4737_v16 }
 0x16e   : > { %v940_v24 = vpop.f32.mrf.mxu0  ;;  %v1020_v56 = vadd.f32 %v3801_v21, %v748_v30 }
 0x16f   : > { %v1011_v25 = vpop.f32.mrf.mxu1  ;;  %v941_v31 = vadd.f32 %v940_v24, %v4741_v23  ;;  %v1042_v35 = vmax.f32 %v939_v27, 0.0 }
 0x170   : > { %v942_v28 = vpop.f32.mrf.mxu0  ;;  %v1012_v42 = vadd.f32 %v1011_v25, %v748_v30  ;;  %v1050_v8 = vmax.f32 %v1020_v56, 0.0 }
 0x171   : > { %v3802_v29 = vpop.f32.mrf.mxu1  ;;  %v943_v32 = vadd.f32 %v942_v28, %v4737_v16  ;;  %v1043_v41 = vmax.f32 %v941_v31, 0.0 }
 0x172   : > { %v944_v33 = vpop.f32.mrf.mxu0  ;;  %v1044_v53 = vmax.f32 %v1012_v42, 0.0  ;;  %v1023_v57 = vadd.f32 %v3802_v29, %v748_v30 }
 0x173   : > { %v1014_v34 = vpop.f32.mrf.mxu1  ;;  %v1045_v36 = vmax.f32 %v943_v32, 0.0  ;;  %v945_v37 = vadd.f32 %v944_v33, %v4741_v23 }
 0x174   : > { %v1015_v38 = vadd.f32 %v1014_v34, %v748_v30  ;;  %v948_v39 = vpop.f32.mrf.mxu0  ;;  %v1053_v9 = vmax.f32 %v1023_v57, 0.0  ;;  %v4029_v57 = vld [vmem:[#allocation7 + $0x114] ss:$8 sps:$4 sm:$0xff]  }
 0x175   : > { %v3805_v40 = vpop.f32.mrf.mxu1  ;;  %v4747_v43 = vpack.c.bf16 %v1045_v36, %v1042_v35  ;;  %v1046_v44 = vmax.f32 %v945_v37, 0.0  ;;  %v949_v45 = vadd.f32 %v948_v39, %v4737_v16 }
 0x176   : > { %v950_v46 = vpop.f32.mrf.mxu0  ;;  %v1047_v48 = vmax.f32 %v1015_v38, 0.0  ;;  %v1036_v15 = vadd.f32 %v3805_v40, %v748_v30  ;;  %v1075_v25 = vpack.c.bf16 %v1053_v9, %v1050_v8  ;;  %v4036_v8 = vld [vmem:[#allocation7 + $0xe0] ss:$8 sps:$4 sm:$0xff]  }
 0x177   : > { %v1027_v47 = vpop.f32.mrf.mxu1  ;;  %v951_v49 = vadd.f32 %v950_v46, %v4741_v23  ;;  %v4751_v50 = vpack.c.bf16 %v1046_v44, %v1043_v41  ;;  %v1048_v54 = vmax.f32 %v949_v45, 0.0 }
 0x178   : > { %v952_v51 = vpop.f32.mrf.mxu0  ;;  %v1074_v60 = vpack.c.bf16 %v1047_v48, %v1044_v53  ;;  %v1028_v2 = vadd.f32 %v1027_v47, %v748_v30  ;;  %v1062_v29 = vmax.f32 %v1036_v15, 0.0  ;;  %v4039_v15 = vld [vmem:[#allocation7 + $0xd0] ss:$8 sps:$4 sm:$0xff]  }
 0x179   : > { %v3806_v52 = vpop.f32.mrf.mxu1  ;;  %v953_v55 = vadd.f32 %v952_v51, %v4737_v16  ;;  %1110 = vrot.lane.b32.xlu0 %v4751_v50, %s4468_s24  ;;  %v1049_v61 = vmax.f32 %v951_v49, 0.0 }
 0x17a   : > { %v954_v58 = vpop.f32.mrf.mxu0  ;;  %v1039_v18 = vadd.f32 %v3806_v52, %v748_v30  ;;  %v1056_v20 = vmax.f32 %v1028_v2, 0.0  ;;  %v4021_v52 = vld [vmem:[#allocation7 + $0x130] ss:$8 sps:$4 sm:$0xff]   ;;  %v4035_v2 = vld [vmem:[#allocation7 + $0xf4] ss:$8 sps:$4 sm:$0xff]  }
 0x17b   : > { %v1030_v59 = vpop.f32.mrf.mxu1  ;;  %v1051_v62 = vmax.f32 %v953_v55, 0.0  ;;  %v955_v63 = vadd.f32 %v954_v58, %v4741_v23  ;;  %v4024_v55 = vld [vmem:[#allocation7 + $0x120] ss:$8 sps:$4 sm:$0xff]   ;;  %v4027_v58 = vld [vmem:[#allocation7 + $0x110] ss:$8 sps:$4 sm:$0xff]  }
 0x17c   : > { %v958_v1 = vpop.f32.mrf.mxu0  ;;  %v1031_v6 = vadd.f32 %v1030_v59, %v748_v30  ;;  %v1065_v31 = vmax.f32 %v1039_v18, 0.0  ;;  %v4044_v18 = vld [vmem:[#allocation7 + $0xc4] ss:$8 sps:$4 sm:$0xff]  }
 0x17d   : > { %v4757_v3 = vpack.c.bf16 %v1051_v62, %v1048_v54  ;;  %v1052_v4 = vmax.f32 %v955_v63, 0.0  ;;  %1112 = vrot.lane.b32.xlu0 %v1074_v60, %s4468_s24  ;;  %v959_v5 = vadd.f32 %v958_v1, %v4737_v16  ;;  %v4026_v54 = vld [vmem:[#allocation7 + $0x124] ss:$8 sps:$4 sm:$0xff]   ;;  %v4030_v62 = vld [vmem:[#allocation7 + $0x100] ss:$8 sps:$4 sm:$0xff]  }
 0x17e   : > { %v960_v7 = vpop.f32.mrf.mxu0  ;;  %v1059_v22 = vmax.f32 %v1031_v6, 0.0  ;;  %v1077_v40 = vpack.c.bf16 %v1065_v31, %v1062_v29  ;;  %v4032_v60 = vld [vmem:[#allocation7 + $0x104] ss:$8 sps:$4 sm:$0xff]   ;;  %v4059_v29 = vld [vmem:[#allocation8 + $0x74] ss:$8 sps:$4 sm:$0xff]  }
 0x17f   : > { %v4761_v10 = vpack.c.bf16 %v1052_v4, %v1049_v61  ;;  %v961_v13 = vadd.f32 %v960_v7, %v4741_v23  ;;  %v1054_v19 = vmax.f32 %v959_v5, 0.0  ;;  %v4033_v4 = vld [vmem:[#allocation7 + $0xf0] ss:$8 sps:$4 sm:$0xff]   ;;  %v4038_v6 = vld [vmem:[#allocation7 + $0xe4] ss:$8 sps:$4 sm:$0xff]   ;;  %2156 = vmatprep.subr.bf16.mxu1 %v4059_v29 }
 0x180   : > { %v962_v17 = vpop.f32.mrf.mxu0  ;;  %v1076_v34 = vpack.c.bf16 %v1059_v22, %v1056_v20  ;;  %v4047_v20 = vld [vmem:[#allocation7 + $0x174] ss:$8 sps:$4 sm:$0xff]   ;;  %v4050_v22 = vld [vmem:[#allocation7 + $0x164] ss:$8 sps:$4 sm:$0xff]   ;;  %v4057_v31 = vld [vmem:[#allocation8 + $0x70] ss:$8 sps:$4 sm:$0xff]  }
 0x181   : > { %1114 = vrot.lane.b32.xlu1 %v4761_v10, %s4468_s24  ;;  %v963_v21 = vadd.f32 %v962_v17, %v4737_v16  ;;  %v1055_v26 = vmax.f32 %v961_v13, 0.0  ;;  %v4041_v13 = vld [vmem:[#allocation7 + $0xd4] ss:$8 sps:$4 sm:$0xff]   ;;  %v4137_v29 = vld [vmem:[#allocation8 + $0x84] ss:$8 sps:$4 sm:$0xff]  }
 0x182   : > { %v964_v24 = vpop.f32.mrf.mxu0 }
 0x183   : > { %v1057_v27 = vmax.f32 %v963_v21, 0.0  ;;  %v965_v28 = vadd.f32 %v964_v24, %v4741_v23  ;;  %v4045_v21 = vld [vmem:[#allocation7 + $0x170] ss:$8 sps:$4 sm:$0xff]   ;;  %v4048_v24 = vld [vmem:[#allocation7 + $0x160] ss:$8 sps:$4 sm:$0xff]  }
 0x184   : > { %v968_v32 = vpop.f32.mrf.mxu0 }
 0x185   : > { %v4768_v33 = vpack.c.bf16 %v1057_v27, %v1054_v19  ;;  %1116 = vrot.lane.b32.xlu1 %v1075_v25, %s4468_s24  ;;  %v1058_v30 = vmax.f32 %v965_v28, 0.0  ;;  %v969_v35 = vadd.f32 %v968_v32, %v4737_v16  ;;  %v4042_v19 = vld [vmem:[#allocation7 + $0xc0] ss:$8 sps:$4 sm:$0xff]   ;;  %v4053_v25 = vld [vmem:[#allocation7 + $0x154] ss:$8 sps:$4 sm:$0xff]  }
 0x186   : > { %v970_v36 = vpop.f32.mrf.mxu0  ;;  %v4056_v27 = vld [vmem:[#allocation7 + $0x144] ss:$8 sps:$4 sm:$0xff]   ;;  %v4054_v28 = vld [vmem:[#allocation7 + $0x140] ss:$8 sps:$4 sm:$0xff]   ;;  %v4062_v32 = vld [vmem:[#allocation8 + $0x234] ss:$8 sps:$4 sm:$0xff]  }
 0x187   : > { %v4772_v37 = vpack.c.bf16 %v1058_v30, %v1055_v26  ;;  %v971_v38 = vadd.f32 %v970_v36, %v4741_v23  ;;  %v1060_v41 = vmax.f32 %v969_v35, 0.0  ;;  %v4051_v26 = vld [vmem:[#allocation7 + $0x150] ss:$8 sps:$4 sm:$0xff]   ;;  %v4063_v35 = vld [vmem:[#allocation8 + $0x60] ss:$8 sps:$4 sm:$0xff]  }
 0x188   : > { %v972_v39 = vpop.f32.mrf.mxu0  ;;  %v4060_v30 = vld [vmem:[#allocation8 + $0x230] ss:$8 sps:$4 sm:$0xff]   ;;  %v4068_v36 = vld [vmem:[#allocation8 + $0x224] ss:$8 sps:$4 sm:$0xff]  }
 0x189   : > { %v973_v42 = vadd.f32 %v972_v39, %v4737_v16  ;;  %1120 = vrot.lane.b32.xlu1 %v1076_v34, %s4468_s24  ;;  %1118 = vrot.lane.b32.xlu0 %v4772_v37, %s4468_s24  ;;  %v1061_v45 = vmax.f32 %v971_v38, 0.0  ;;  %v4065_v34 = vld [vmem:[#allocation8 + $0x64] ss:$8 sps:$4 sm:$0xff]   ;;  %v4066_v38 = vld [vmem:[#allocation8 + $0x220] ss:$8 sps:$4 sm:$0xff]  }
 0x18a   : > { %v974_v44 = vpop.f32.mrf.mxu0  ;;  %v4071_v39 = vld [vmem:[#allocation8 + $0x54] ss:$8 sps:$4 sm:$0xff]  }
 0x18b   : > { %v1063_v46 = vmax.f32 %v973_v42, 0.0  ;;  %v975_v47 = vadd.f32 %v974_v44, %v4741_v23  ;;  %v4072_v42 = vld [vmem:[#allocation8 + $0x210] ss:$8 sps:$4 sm:$0xff]   ;;  %v4077_v44 = vld [vmem:[#allocation8 + $0x44] ss:$8 sps:$4 sm:$0xff]  }
 0x18d   : > { %v4780_v48 = vpack.c.bf16 %v1063_v46, %v1060_v41  ;;  %v1064_v49 = vmax.f32 %v975_v47, 0.0  ;;  %1124 = vrot.lane.b32.xlu1 %v1077_v40, %s4468_s24  ;;  %v4069_v40 = vld [vmem:[#allocation8 + $0x50] ss:$8 sps:$4 sm:$0xff]   ;;  %v4074_v41 = vld [vmem:[#allocation8 + $0x214] ss:$8 sps:$4 sm:$0xff]  }
 0x18e   : > { %v4080_v46 = vld [vmem:[#allocation8 + $0x204] ss:$8 sps:$4 sm:$0xff]   ;;  %v4078_v47 = vld [vmem:[#allocation8 + $0x200] ss:$8 sps:$4 sm:$0xff]  }
 0x18f   : > { %5485 = vst [vmem:[#allocation21_spill] sm:$0xff] %v4780_v48  ;;  %v4783_v51 = vpack.c.bf16 %v1064_v49, %v1061_v45  ;;  %v4075_v45 = vld [vmem:[#allocation8 + $0x40] ss:$8 sps:$4 sm:$0xff]   ;;  %v4083_v49 = vld [vmem:[#allocation8 + $0x34] ss:$8 sps:$4 sm:$0xff]  }
 0x191   : > { %5486 = vst [vmem:[#allocation22_spill] sm:$0xff] %v4783_v51  ;;  %1122 = vrot.lane.b32.xlu0 %v4783_v51, %s4468_s24 }
 0x1eb   : > { %v1111_v16 = vpop.permute.xlu0 %1110 }
 0x1ef   : > { %v1113_v53 = vpop.permute.xlu0 %1112 }
 0x1f0   : > { %3496 = vmatprep.mubr.msk.bf16.mxu0 %vm1126_vm0, %v1113_v53  ;;  %3524 = vmatprep.mubr.msk.bf16.mxu1 %vm1126_vm0, %v1113_v53  ;;  %v4790_v23 = vsel %vm1126_vm0, %v1111_v16, %v1113_v53  ;;  %v4081_v16 = vld [vmem:[#allocation8 + $0x30] ss:$8 sps:$4 sm:$0xff]  }
 0x1f1   : > { %1301 = vmatmul.mubr.bf16.vlgmr.msra.gmra.mxu0 %v4790_v23  ;;  %1544 = vmatmul.mubr.bf16.vlgmr.msra.gmra.mxu1 %v4790_v23 }
 0x1f2   : > { %1717 = vmatpush1.bf16.msra.mxu0 %v4021_v52  ;;  %2157 = vmatpush1.bf16.msra.mxu1 %v4057_v31  ;;  %v4086_v52 = vld [vmem:[#allocation8 + $0x1f4] ss:$8 sps:$4 sm:$0xff]   ;;  %v4135_v31 = vld [vmem:[#allocation8 + $0x80] ss:$8 sps:$4 sm:$0xff]  }
 0x1f3   : > { %v1115_v56 = vpop.permute.xlu1 %1114  ;;  %1718 = vmatprep.subr.bf16.mxu0 %v4026_v54  ;;  %2158 = vmatprep.subr.bf16.mxu1 %v4065_v34  ;;  %v4089_v54 = vld [vmem:[#allocation8 + $0x24] ss:$8 sps:$4 sm:$0xff]   ;;  %v4143_v34 = vld [vmem:[#allocation8 + $0x154] ss:$8 sps:$4 sm:$0xff]  }
 0x1f6   : > { %1719 = vmatpush1.bf16.msra.mxu0 %v4024_v55  ;;  %2159 = vmatpush1.bf16.msra.mxu1 %v4063_v35  ;;  %v4092_v55 = vld [vmem:[#allocation8 + $0x1e4] ss:$8 sps:$4 sm:$0xff]  }
 0x1f7   : > { %v1117_v59 = vpop.permute.xlu1 %1116  ;;  %1720 = vmatprep.subr.bf16.mxu0 %v4029_v57  ;;  %2160 = vmatprep.subr.bf16.mxu1 %v4071_v39  ;;  %v4095_v57 = vld [vmem:[#allocation8 + $0x14] ss:$8 sps:$4 sm:$0xff]  }
 0x1f8   : > { %3497 = vmatprep.mubr.msk.bf16.mxu0 %vm1126_vm0, %v1117_v59  ;;  %3525 = vmatprep.mubr.msk.bf16.mxu1 %vm1126_vm0, %v1117_v59  ;;  %v1128_v61 = vsel %vm1126_vm0, %v1115_v56, %v1117_v59  ;;  %v4090_v56 = vld [vmem:[#allocation8 + $0x1e0] ss:$8 sps:$4 sm:$0xff]  }
 0x1f9   : > { %1311 = vmatmul.mubr.bf16.gmra.mxu0 %v1128_v61  ;;  %1554 = vmatmul.mubr.bf16.gmra.mxu1 %v1128_v61 }
 0x1fa   : > { %1721 = vmatpush1.bf16.msra.mxu0 %v4027_v58  ;;  %2161 = vmatpush1.bf16.msra.mxu1 %v4069_v40  ;;  %v4093_v58 = vld [vmem:[#allocation8 + $0x10] ss:$8 sps:$4 sm:$0xff]  }
 0x1fb   : > { %1722 = vmatprep.subr.bf16.mxu0 %v4032_v60  ;;  %v1121_v63 = vpop.permute.xlu1 %1120  ;;  %v1119_v1 = vpop.permute.xlu0 %1118  ;;  %2162 = vmatprep.subr.bf16.mxu1 %v4077_v44  ;;  %v4096_v60 = vld [vmem:[#allocation8 + $0x1d0] ss:$8 sps:$4 sm:$0xff]  }
 0x1fc   : > { %3498 = vmatprep.mubr.msk.bf16.mxu0 %vm1126_vm0, %v1121_v63  ;;  %3526 = vmatprep.mubr.msk.bf16.mxu1 %vm1126_vm0, %v1121_v63  ;;  %v1129_v5 = vsel %vm1126_vm0, %v1119_v1, %v1121_v63  ;;  %v4102_v1 = vld [vmem:[#allocation8 + $0x1c0] ss:$8 sps:$4 sm:$0xff]  }
 0x1fe   : > { %1723 = vmatpush1.bf16.msra.mxu0 %v4030_v62  ;;  %2163 = vmatpush1.bf16.msra.mxu1 %v4075_v45  ;;  %v4099_v62 = vld [vmem:[#allocation8] ss:$8 sps:$4 sm:$0xff]  }
 0x1ff   : > { %1724 = vmatprep.subr.bf16.mxu0 %v4035_v2  ;;  %v1125_v7 = vpop.permute.xlu1 %1124  ;;  %2164 = vmatprep.subr.bf16.mxu1 %v4083_v49  ;;  %v4107_v2 = vld [vmem:[#allocation8 + $0xd4] ss:$8 sps:$4 sm:$0xff]  }
 0x201   : > { %1321 = vmatmul.mubr.bf16.gmra.mxu0 %v1129_v5  ;;  %1564 = vmatmul.mubr.bf16.gmra.mxu1 %v1129_v5 }
 0x202   : > { %1725 = vmatpush1.bf16.msra.mxu0 %v4033_v4  ;;  %3499 = vmatprep.mubr.msk.bf16.mxu0 %vm1126_vm0, %v1125_v7  ;;  %v4110_v4 = vld [vmem:[#allocation8 + $0x294] ss:$8 sps:$4 sm:$0xff]  }
 0x203   : > { %1726 = vmatprep.subr.bf16.mxu0 %v4038_v6  ;;  %v1123_v9 = vpop.permute.xlu0 %1122  ;;  %3527 = vmatprep.mubr.msk.bf16.mxu1 %vm1126_vm0, %v1125_v7  ;;  %v4108_v6 = vld [vmem:[#allocation8 + $0x290] ss:$8 sps:$4 sm:$0xff]  }
 0x204   : > { %v1130_v17 = vsel %vm1126_vm0, %v1123_v9, %v1125_v7  ;;  %2165 = vmatpush1.bf16.msra.mxu1 %v4081_v16  ;;  %v4111_v9 = vld [vmem:[#allocation8 + $0xc0] ss:$8 sps:$4 sm:$0xff]  }
 0x205   : > { %2166 = vmatprep.subr.bf16.mxu1 %v4089_v54 }
 0x206   : > { %1727 = vmatpush1.bf16.msra.mxu0 %v4036_v8  ;;  %v4116_v8 = vld [vmem:[#allocation8 + $0x284] ss:$8 sps:$4 sm:$0xff]  }
 0x207   : > { %1728 = vmatprep.subr.bf16.mxu0 %v4041_v13  ;;  %v4114_v13 = vld [vmem:[#allocation8 + $0x280] ss:$8 sps:$4 sm:$0xff]  }
 0x209   : > { %1331 = vmatmul.mubr.bf16.gmra.mxu0 %v1130_v17  ;;  %1574 = vmatmul.mubr.bf16.gmra.mxu1 %v1130_v17 }
 0x20a   : > { %1729 = vmatpush1.bf16.msra.mxu0 %v4039_v15  ;;  %3552 = vmatprep.mubr.msk.bf16.mxu0 %vm1126_vm0, %v1113_v53  ;;  %v4084_v53 = vld [vmem:[#allocation8 + $0x1f0] ss:$8 sps:$4 sm:$0xff]   ;;  %v4119_v15 = vld [vmem:[#allocation8 + $0xb4] ss:$8 sps:$4 sm:$0xff]  }
 0x20b   : > { %1730 = vmatprep.subr.bf16.mxu0 %v4044_v18  ;;  %v4122_v18 = vld [vmem:[#allocation8 + $0x274] ss:$8 sps:$4 sm:$0xff]  }
 0x20e   : > { %1731 = vmatpush1.bf16.msra.mxu0 %v4042_v19  ;;  %v4120_v19 = vld [vmem:[#allocation8 + $0x270] ss:$8 sps:$4 sm:$0xff]  }
 0x20f   : > { %1740 = vmatprep.subr.bf16.mxu0 %v4047_v20  ;;  %v4125_v20 = vld [vmem:[#allocation8 + $0xa4] ss:$8 sps:$4 sm:$0xff]  }
 0x212   : > { %1741 = vmatpush2.bf16.msra.mxu0 %v4045_v21  ;;  %v4123_v21 = vld [vmem:[#allocation8 + $0xa0] ss:$8 sps:$4 sm:$0xff]  }
 0x213   : > { %1742 = vmatprep.subr.bf16.mxu0 %v4050_v22  ;;  %v4128_v22 = vld [vmem:[#allocation8 + $0x264] ss:$8 sps:$4 sm:$0xff]  }
 0x216   : > { %1743 = vmatpush2.bf16.msra.mxu0 %v4048_v24  ;;  %v4126_v24 = vld [vmem:[#allocation8 + $0x260] ss:$8 sps:$4 sm:$0xff]  }
 0x217   : > { %1744 = vmatprep.subr.bf16.mxu0 %v4053_v25  ;;  %v4131_v25 = vld [vmem:[#allocation8 + $0x94] ss:$8 sps:$4 sm:$0xff]  }
 0x21a   : > { %1745 = vmatpush2.bf16.msra.mxu0 %v4051_v26  ;;  %v4129_v26 = vld [vmem:[#allocation8 + $0x90] ss:$8 sps:$4 sm:$0xff]  }
 0x21b   : > { %1746 = vmatprep.subr.bf16.mxu0 %v4056_v27  ;;  %v4134_v27 = vld [vmem:[#allocation8 + $0x254] ss:$8 sps:$4 sm:$0xff]  }
 0x21e   : > { %1747 = vmatpush2.bf16.msra.mxu0 %v4054_v28  ;;  %v4132_v28 = vld [vmem:[#allocation8 + $0x250] ss:$8 sps:$4 sm:$0xff]  }
 0x21f   : > { %2427 = vmatprep.subr.bf16.mxu0 %v4062_v32  ;;  %v4140_v32 = vld [vmem:[#allocation8 + $0x244] ss:$8 sps:$4 sm:$0xff]  }
 0x221   : > { %1749 = vmatmul.mubr.bf16.vlgmr.msra.gmra.mxu0 %v4790_v23  ;;  %v4087_v23 = vld [vmem:[#allocation8 + $0x20] ss:$8 sps:$4 sm:$0xff]  }
 0x222   : > { %3553 = vmatprep.mubr.msk.bf16.mxu0 %vm1126_vm0, %v1117_v59  ;;  %2428 = vmatpush1.bf16.msra.mxu0 %v4060_v30  ;;  %v4098_v59 = vld [vmem:[#allocation8 + $0x1d4] ss:$8 sps:$4 sm:$0xff]   ;;  %v4138_v30 = vld [vmem:[#allocation8 + $0x240] ss:$8 sps:$4 sm:$0xff]  }
 0x223   : > { %2429 = vmatprep.subr.bf16.mxu0 %v4068_v36  ;;  %2167 = vmatpush1.bf16.msra.mxu1 %v4087_v23 }
 0x224   : > { %2168 = vmatprep.subr.bf16.mxu1 %v4095_v57  ;;  %v472_v57 = vadd.s32 8, %v4725_v11 }
 0x226   : > { %2430 = vmatpush1.bf16.msra.mxu0 %v4066_v38 }
 0x227   : > { %2431 = vmatprep.subr.bf16.mxu0 %v4074_v41  ;;  %2169 = vmatpush1.bf16.msra.mxu1 %v4093_v58 }
 0x229   : > { %1759 = vmatmul.mubr.bf16.gmra.mxu0 %v1128_v61  ;;  %v4101_v61 = vld [vmem:[#allocation8 + $0x4] ss:$8 sps:$4 sm:$0xff]  }
 0x22a   : > { %3554 = vmatprep.mubr.msk.bf16.mxu0 %vm1126_vm0, %v1121_v63  ;;  %2432 = vmatpush1.bf16.msra.mxu0 %v4072_v42  ;;  %v4104_v63 = vld [vmem:[#allocation8 + $0x1c4] ss:$8 sps:$4 sm:$0xff]  }
 0x22b   : > { %2433 = vmatprep.subr.bf16.mxu0 %v4080_v46  ;;  %2170 = vmatprep.subr.bf16.mxu1 %v4101_v61  ;;  %v483_v61 = vand.u32 7, %v4725_v11 }
 0x22c   : > { %2171 = vmatpush1.bf16.msra.mxu1 %v4099_v62  ;;  %v490_v62 = vand.u32 7, %v472_v57 }
 0x22d   : > { %2176 = vmatprep.subr.bf16.mxu1 %v4107_v2  ;;  %vm4860_vm2 = vcmp.lt.s32.totalorder %v483_v61, 7  ;;  %vm4948_vm9 = vcmp.ge.s32.totalorder %v483_v61, 1 }
 0x22e   : > { %2434 = vmatpush1.bf16.msra.mxu0 %v4078_v47  ;;  %vm4865_vm4 = vcmp.ge.s32.totalorder %v490_v62, 1  ;;  %vm4877_vm5 = vcmp.lt.s32.totalorder %v490_v62, 7 }
 0x22f   : > { %2435 = vmatprep.subr.bf16.mxu0 %v4086_v52 }
 0x231   : > { %1769 = vmatmul.mubr.bf16.gmra.mxu0 %v1129_v5  ;;  %v4105_v5 = vld [vmem:[#allocation8 + $0xd0] ss:$8 sps:$4 sm:$0xff]  }
 0x232   : > { %3555 = vmatprep.mubr.msk.bf16.mxu0 %vm1126_vm0, %v1125_v7  ;;  %2436 = vmatpush1.bf16.msra.mxu0 %v4084_v53  ;;  %v4113_v7 = vld [vmem:[#allocation8 + $0xc4] ss:$8 sps:$4 sm:$0xff]  }
 0x233   : > { %2437 = vmatprep.subr.bf16.mxu0 %v4092_v55  ;;  %2177 = vmatpush2.bf16.msra.mxu1 %v4105_v5 }
 0x234   : > { %2178 = vmatprep.subr.bf16.mxu1 %v4113_v7 }
 0x236   : > { %2438 = vmatpush1.bf16.msra.mxu0 %v4090_v56 }
 0x237   : > { %2439 = vmatprep.subr.bf16.mxu0 %v4098_v59  ;;  %2179 = vmatpush2.bf16.msra.mxu1 %v4111_v9  ;;  %v473_v59 = vadd.s32 16, %v4725_v11  ;;  %v4870_v9 = vadd.s32 40, %v4725_v11 }
 0x238   : > { %2180 = vmatprep.subr.bf16.mxu1 %v4119_v15 }
 0x239   : > { %1779 = vmatmul.mubr.bf16.gmra.mxu0 %v1130_v17  ;;  %v4117_v17 = vld [vmem:[#allocation8 + $0xb0] ss:$8 sps:$4 sm:$0xff]   ;;  %v497_v2 = vand.u32 7, %v473_v59 }
 0x23a   : > { %2440 = vmatpush1.bf16.msra.mxu0 %v4096_v60 }
 0x23b   : > { %2441 = vmatprep.subr.bf16.mxu0 %v4104_v63  ;;  %2181 = vmatpush2.bf16.msra.mxu1 %v4117_v17  ;;  %v474_v63 = vadd.s32 24, %v4725_v11  ;;  %vm4888_vm6 = vcmp.ge.s32.totalorder %v497_v2, 1  ;;  %vm4900_vm7 = vcmp.lt.s32.totalorder %v497_v2, 7 }
 0x23c   : > { %2182 = vmatprep.subr.bf16.mxu1 %v4125_v20 }
 0x23e   : > { %2442 = vmatpush1.bf16.msra.mxu0 %v4102_v1 }
 0x23f   : > { %2447 = vmatprep.subr.bf16.mxu0 %v4110_v4  ;;  %2183 = vmatpush2.bf16.msra.mxu1 %v4123_v21  ;;  %v4855_v4 = vadd.s32 32, %v4725_v11 }
 0x240   : > { %2184 = vmatprep.subr.bf16.mxu1 %v4131_v25 }
 0x242   : > { %2448 = vmatpush2.bf16.msra.mxu0 %v4108_v6 }
 0x243   : > { %2449 = vmatprep.subr.bf16.mxu0 %v4116_v8  ;;  %2185 = vmatpush2.bf16.msra.mxu1 %v4129_v26  ;;  %v504_v8 = vand.u32 7, %v474_v63  ;;  %v5452_v26 = vand.u32 7, %v4855_v4 }
 0x244   : > { %2186 = vmatprep.subr.bf16.mxu1 %v4137_v29 }
 0x245   : > { %vm4904_vm8 = vcmp.ge.s32.totalorder %v504_v8, 1  ;;  %vm4966_vm10 = vcmp.lt.s32.totalorder %v504_v8, 7  ;;  %vm4972_vm11 = vcmp.ge.s32.totalorder %v5452_v26, 1 }
 0x246   : > { %2450 = vmatpush2.bf16.msra.mxu0 %v4114_v13  ;;  %v4873_v13 = vadd.s32 48, %v4725_v11 }
 0x247   : > { %2451 = vmatprep.subr.bf16.mxu0 %v4122_v18  ;;  %2187 = vmatpush2.bf16.msra.mxu1 %v4135_v31 }
 0x248   : > { %2652 = vmatprep.subr.bf16.mxu1 %v4143_v34 }
 0x24a   : > { %2452 = vmatpush2.bf16.msra.mxu0 %v4120_v19 }
 0x24b   : > { %2453 = vmatprep.subr.bf16.mxu0 %v4128_v22 }
 0x24e   : > { %2454 = vmatpush2.bf16.msra.mxu0 %v4126_v24  ;;  %v1584_v24 = vld [vmem:[%s5435_s4] sm:$0x3] }
 0x24f   : > { %2455 = vmatprep.subr.bf16.mxu0 %v4134_v27 }
 0x252   : > { %2456 = vmatpush2.bf16.msra.mxu0 %v4132_v28 }
 0x253   : > { %2457 = vmatprep.subr.bf16.mxu0 %v4140_v32 }
 0x256   : > { %2458 = vmatpush2.bf16.msra.mxu0 %v4138_v30 }
 0x2b1   : > { %v4808_v35 = vpop.f32.mrf.mxu0  ;;  %v4818_v41 = vpop.f32.mrf.mxu1 }
 0x2b2   : > { %v1789_v27 = vrot.slane %v4808_v35, 7  ;;  %v5451_v28 = vrot.slane %v4818_v41, 1  ;;  %v4953_v35 = vrot.slane %v1584_v24, %v4734_v14 }
 0x2b3   : > { %v4810_v36 = vpop.f32.mrf.mxu0  ;;  %v4824_v45 = vpop.f32.mrf.mxu1 }
 0x2b4   : > { %v5450_v29 = vrot.slane %v4824_v45, 1  ;;  %v1790_v30 = vrot.slane %v4810_v36, 7 }
 0x2b5   : > { %v4812_v38 = vpop.f32.mrf.mxu0  ;;  %v1549_v49 = vpop.f32.mrf.mxu1 }
 0x2b6   : > { %v1791_v15 = vrot.slane %v4812_v38, 7  ;;  %v1872_v17 = vrot.slane %v1549_v49, 1  ;;  %v4911_v49 = vadd.s32 56, %v4725_v11 }
 0x2b7   : > { %v4814_v39 = vpop.f32.mrf.mxu0  ;;  %v4832_v52 = vpop.f32.mrf.mxu1 }
 0x2b8   : > { %v1873_v18 = vrot.slane %v4832_v52, 1  ;;  %v1792_v20 = vrot.slane %v4814_v39, 7  ;;  %v4917_v36 = vsel %vm1886_vm1, %v5451_v28, %v1872_v17  ;;  %v4926_v52 = vrot.slane %v1584_v24, %v4728_v12 }
 0x2b9   : > { %v4816_v40 = vpop.f32.mrf.mxu0  ;;  %v4836_v54 = vpop.f32.mrf.mxu1  ;;  %v5523_v34 = vand.u32 7, %v4911_v49 }
 0x2ba   : > { %v1874_v21 = vrot.slane %v4836_v54, 1  ;;  %v1793_v31 = vrot.slane %v4816_v40, 7  ;;  %v4923_v40 = vsel %vm1886_vm1, %v5450_v29, %v1873_v18  ;;  %v1818_v54 = vsel %vm1805_vm3, %v1789_v27, %v1791_v15 }
 0x2bb   : > { %v4820_v42 = vpop.f32.mrf.mxu0  ;;  %v4840_v55 = vpop.f32.mrf.mxu1  ;;  %v1819_v2 = vsel %vm1805_vm3, %v1790_v30, %v1792_v20 }
 0x2bc   : > { %v4932_v57 = vsel %vm1886_vm1, %v1872_v17, %v1874_v21  ;;  %v1875_v59 = vrot.slane %v4840_v55, 1  ;;  %v1794_v0 = vrot.slane %v4820_v42, 7  ;;  %v4945_v39 = vsel %vm1805_vm3, %v1791_v15, %v1793_v31 }
 0x2bd   : > { %v4822_v44 = vpop.f32.mrf.mxu0  ;;  %v4845_v58 = vpop.f32.mrf.mxu1  ;;  %v1920_v15 = vsel %vm4860_vm2, %v4923_v40, 0.0  ;;  %v1841_v61 = vsel %vm4865_vm4, %v1819_v2, 0.0  ;;  %v1921_v8 = vsel %vm4877_vm5, %v4932_v57, 0.0  ;;  %v5517_v24 = vsel %vm4888_vm6, %v4945_v39, 0.0 }
 0x2be   : > { %v1876_v29 = vrot.slane %v4845_v58, 1  ;;  %v1795_v17 = vrot.slane %v4822_v44, 7  ;;  %v1919_v58 = vsel %vm4860_vm2, %v4917_v36, 0.0  ;;  %v1840_v44 = vsel %vm4865_vm4, %v1818_v54, 0.0 }
 0x2bf   : > { %v4826_v46 = vpop.f32.mrf.mxu0  ;;  %v4852_v1 = vpop.f32.mrf.mxu1  ;;  %v1898_v6 = vsel %vm1886_vm1, %v1873_v18, %v1875_v59  ;;  %vm5142_vm4 = vcmp.ge.s32.totalorder %v5523_v34, 1 }
 0x2c0   : > { %v4992_v2 = vsel %vm1886_vm1, %v1874_v21, %v1876_v29  ;;  %v1796_v57 = vrot.slane %v4826_v46, 7  ;;  %v1877_v12 = vrot.slane %v4852_v1, 1  ;;  %v5006_v21 = vsel %vm1805_vm3, %v1793_v31, %v1795_v17 }
 0x2c1   : > { %v4828_v47 = vpop.f32.mrf.mxu0  ;;  %v4883_v22 = vpop.f32.mrf.mxu1  ;;  %v1922_v31 = vsel %vm4877_vm5, %v1898_v6, 0.0  ;;  %v1844_v55 = vsel %vm4904_vm8, %v5006_v21, 0.0 }
 0x2c2   : > { %v1878_v14 = vrot.slane %v4883_v22, 1  ;;  %v1896_v19 = vsel %vm1886_vm1, %v1875_v59, %v1877_v12 }
 0x2c3   : > { %v4830_v16 = vpop.f32.mrf.mxu0  ;;  %v4935_v62 = vpop.f32.mrf.mxu1 }
 0x2c5   : > { %v4834_v53 = vpop.f32.mrf.mxu0  ;;  %v4978_v36 = vpop.f32.mrf.mxu1 }
 0x2c7   : > { %v4838_v23 = vpop.f32.mrf.mxu0  ;;  %v5013_v48 = vpop.f32.mrf.mxu1 }
 0x2c8   : > { %v1881_v39 = vrot.slane %v5013_v48, 1 }
 0x2c9   : > { %v4842_v56 = vpop.f32.mrf.mxu0 }
 0x2cb   : > { %v4848_v60 = vpop.f32.mrf.mxu0 }
 0x2cd   : > { %v4858_v5 = vpop.f32.mrf.mxu0 }
 0x2ce   : > { %v5455_v28 = vrot.slane %v4858_v5, 7 }
 0x2cf   : > { %v4897_v32 = vpop.f32.mrf.mxu0 }
 0x2d0   : > { %v5505_v40 = vrot.slane %v4897_v32, 7  ;;  %v1820_v26 = vsel %vm1805_vm3, %v5455_v28, %v1789_v27  ;;  %v5457_v27 = vrot.slane %v4935_v62, 1 }
 0x2d1   : > { %v1838_v46 = vsel %vm4948_vm9, %v1820_v26, 0.0  ;;  %v5506_v26 = vand.u32 7, %v4855_v4 }
 0x2d2   : > { %v1821_v7 = vsel %vm1805_vm3, %v5505_v40, %v1790_v30  ;;  %v1817_v40 = vsel %vm1805_vm3, %v1792_v20, %v1794_v0  ;;  %v1894_v4 = vsel %vm1886_vm1, %v1877_v12, %v5457_v27 }
 0x2d3   : > { %v1839_v28 = vsel %vm4948_vm9, %v1821_v7, 0.0  ;;  %v1843_v7 = vsel %vm4888_vm6, %v1817_v40, 0.0  ;;  %vm5030_vm12 = vcmp.lt.s32.totalorder %v5506_v26, 7  ;;  %v1893_v40 = vsel %vm1886_vm1, %v1876_v29, %v1878_v14 }
 0x2d4   : > { %v5510_v26 = vand.u32 7, %v4870_v9 }
 0x2d6   : > { %vm5057_vm14 = vcmp.ge.s32.totalorder %v5510_v26, 1 }
 0x2e1   : > { %v1750_v42 = vpop.f32.mrf.mxu0 }
 0x2e2   : > { %v1751_v18 = vadd.f32 %v1750_v42, %v4926_v52 }
 0x2e3   : > { %v1752_v30 = vpop.f32.mrf.mxu0 }
 0x2e4   : > { %v1753_v54 = vadd.f32 %v1752_v30, %v4953_v35  ;;  %v1854_v42 = vadd.f32 %v1838_v46, %v1751_v18  ;;  %v1815_v18 = vsel %vm1805_vm3, %v1794_v0, %v1796_v57  ;;  %v5509_v46 = vrot.slane %v4828_v47, 7  ;;  %v5053_v0 = vpop.f32.mrf.mxu1 }
 0x2e5   : > { %v1754_v20 = vpop.f32.mrf.mxu0 }
 0x2e6   : > { %v1855_v1 = vadd.f32 %v1839_v28, %v1753_v54  ;;  %v1755_v30 = vadd.f32 %v1754_v20, %v4926_v52  ;;  %v5050_v59 = vsel %vm1805_vm3, %v1795_v17, %v5509_v46  ;;  %v1935_v12 = vadd.f32 %v1919_v58, %v1854_v42  ;;  %v5089_v9 = vpop.f32.mrf.mxu1 }
 0x2e7   : > { %v1756_v51 = vpop.f32.mrf.mxu0  ;;  %v1924_v17 = vsel %vm4900_vm7, %v1896_v19, 0.0  ;;  %v5513_v58 = vmov %v5510_v26  ;;  %v5518_v26 = vand.u32 7, %v4873_v13 }
 0x2e8   : > { %v1856_v6 = vadd.f32 %v1840_v44, %v1755_v30  ;;  %v1757_v54 = vadd.f32 %v1756_v51, %v4953_v35  ;;  %v1880_v51 = vrot.slane %v4978_v36, 1  ;;  %v1936_v44 = vadd.f32 %v1920_v15, %v1855_v1 }
 0x2e9   : > { %v1760_v20 = vpop.f32.mrf.mxu0  ;;  %v1845_v36 = vsel %vm4904_vm8, %v1815_v18, 0.0  ;;  %vm5074_vm15 = vcmp.lt.s32.totalorder %v5513_v58, 7  ;;  %v1799_v1 = vrot.slane %v4834_v53, 7  ;;  %v1882_v53 = vrot.slane %v5053_v0, 1 }
 0x2ea   : > { %v1937_v29 = vadd.f32 %v1921_v8, %v1856_v6  ;;  %v1857_v30 = vadd.f32 %v1841_v61, %v1757_v54  ;;  %v1761_v27 = vadd.f32 %v1760_v20, %v4926_v52  ;;  %v1925_v61 = vsel %vm4966_vm10, %v1893_v40, 0.0 }
 0x2eb   : > { %v1762_v21 = vpop.f32.mrf.mxu0  ;;  %v1846_v8 = vsel %vm4972_vm11, %v5050_v59, 0.0  ;;  %v5516_v6 = vrot.slane %v4830_v16, 7  ;;  %v5087_v18 = vsel %vm1886_vm1, %v1878_v14, %v1880_v51  ;;  %v1952_v40 = vmax.f32 %v1936_v44, 0.0 }
 0x2ec   : > { %v1938_v46 = vadd.f32 %v1922_v31, %v1857_v30  ;;  %v1763_v15 = vadd.f32 %v1762_v21, %v4953_v35  ;;  %v1953_v38 = vmax.f32 %v1937_v29, 0.0  ;;  %v1926_v31 = vsel %vm4966_vm10, %v1894_v4, 0.0 }
 0x2ed   : > { %v1764_v19 = vpop.f32.mrf.mxu0  ;;  %v1813_v54 = vsel %vm1805_vm3, %v1796_v57, %v5516_v6  ;;  %v1951_v29 = vmax.f32 %v1935_v12, 0.0  ;;  %v1858_v4 = vadd.f32 %v5517_v24, %v1761_v27  ;;  %vm5099_vm2 = vcmp.ge.s32.totalorder %v5518_v26, 1 }
 0x2ee   : > { %v1954_v21 = vmax.f32 %v1938_v46, 0.0  ;;  %v1859_v20 = vadd.f32 %v1843_v7, %v1763_v15  ;;  %v1765_v30 = vadd.f32 %v1764_v19, %v4926_v52  ;;  %v1800_v44 = vrot.slane %v4838_v23, 7  ;;  %v4141_v46 = vld [vmem:[#allocation8 + $0x150] ss:$8 sps:$4 sm:$0xff]   ;;  %v4146_v23 = vld [vmem:[#allocation8 + $0x144] ss:$8 sps:$4 sm:$0xff]  }
 0x2ef   : > { %v1766_v57 = vpop.f32.mrf.mxu0  ;;  %v1847_v25 = vsel %vm4972_vm11, %v1813_v54, 0.0  ;;  %v5110_v27 = vpack.c.bf16 %v1953_v38, %v1951_v29  ;;  %v5521_v19 = vrot.slane %v4828_v47, 7  ;;  %v1927_v48 = vsel %vm5030_vm12, %v5087_v18, 0.0 }
 0x2f0   : > { %v5104_v7 = vpack.c.bf16 %v1954_v21, %v1952_v40  ;;  %v1767_v12 = vadd.f32 %v1766_v57, %v4953_v35  ;;  %v1860_v15 = vadd.f32 %v1844_v55, %v1765_v30  ;;  %v1801_v40 = vrot.slane %v4842_v56, 7  ;;  %v5117_v21 = vpop.f32.mrf.mxu1  ;;  %v4144_v30 = vld [vmem:[#allocation8 + $0x140] ss:$8 sps:$4 sm:$0xff]  }
 0x2f1   : > { %v1770_v58 = vpop.f32.mrf.mxu0  ;;  %v1810_v6 = vsel %vm1805_vm3, %v5521_v19, %v1799_v1  ;;  %v1940_v24 = vadd.f32 %v1924_v17, %v1859_v20  ;;  %v1889_v47 = vsel %vm1886_vm1, %v1880_v51, %v1882_v53  ;;  %v1883_v55 = vrot.slane %v5089_v9, 1 }
 0x2f2   : > { %v1861_v57 = vadd.f32 %v1845_v36, %v1767_v12  ;;  %3584 = vmatprep.mubr.msk.bf16.mxu1 %vm2143_vm13, %v5104_v7  ;;  %3616 = vmatprep.mubr.msk.bf16.mxu0 %vm2143_vm13, %v5104_v7  ;;  %v5522_v17 = vsel %vm4900_vm7, %v4992_v2, 0.0  ;;  %v1941_v38 = vadd.f32 %v1925_v61, %v1860_v15  ;;  %v1802_v18 = vrot.slane %v4848_v60, 7  ;;  %v1581_v19 = vpop.f32.mrf.mxu1 }
 0x2f3   : > { %v1939_v36 = vadd.f32 %v5522_v17, %v1858_v4  ;;  %v1772_v54 = vpop.f32.mrf.mxu0  ;;  %2189 = vmatmul.mubr.bf16.vlgmr.msra.gmra.mxu1 %v5110_v27  ;;  %2460 = vmatmul.mubr.bf16.vlgmr.msra.gmra.mxu0 %v5110_v27  ;;  %v1771_v29 = vadd.f32 %v1770_v58, %v4926_v52  ;;  %v5526_v61 = vrot.slane %v4935_v62, 1  ;;  %v4149_v58 = vld [vmem:[#allocation8 + $0x134] ss:$8 sps:$4 sm:$0xff]   ;;  %v1885_v63 = vrot.slane %v1581_v19, 1 }
 0x2f4   : > { %v1942_v20 = vadd.f32 %v1926_v31, %v1861_v57  ;;  %v1773_v51 = vadd.f32 %v1772_v54, %v4953_v35  ;;  %2653 = vmatpush1.bf16.msra.mxu1 %v4141_v46  ;;  %v1957_v26 = vmax.f32 %v1941_v38, 0.0  ;;  %v1848_v31 = vsel %vm5057_vm14, %v1810_v6, 0.0  ;;  %v4161_v6 = vld [vmem:[#allocation8 + $0xf4] ss:$8 sps:$4 sm:$0xff]  }
 0x2f5   : > { %v1892_v4 = vsel %vm1886_vm1, %v5526_v61, %v1881_v39  ;;  %v1774_v12 = vpop.f32.mrf.mxu0  ;;  %2654 = vmatprep.subr.bf16.mxu1 %v4146_v23  ;;  %v5527_v46 = vrot.slane %v4830_v16, 7  ;;  %v1956_v57 = vmax.f32 %v1940_v24, 0.0  ;;  %v1808_v38 = vsel %vm1805_vm3, %v1799_v1, %v1801_v40 }
 0x2f6   : > { %v1958_v17 = vmax.f32 %v1942_v20, 0.0  ;;  %v1775_v62 = vadd.f32 %v1774_v12, %v4926_v52  ;;  %v5528_v54 = vmov %v5523_v34  ;;  %v1890_v16 = vsel %vm1886_vm1, %v1881_v39, %v1883_v55 }
 0x2f7   : > { %v1811_v15 = vsel %vm1805_vm3, %v5527_v46, %v1800_v44  ;;  %vm5163_vm5 = vcmp.lt.s32.totalorder %v5528_v54, 7  ;;  %v1955_v23 = vmax.f32 %v1939_v36, 0.0  ;;  %v1863_v24 = vadd.f32 %v1847_v25, %v1773_v51  ;;  %v1776_v34 = vpop.f32.mrf.mxu0  ;;  %v4147_v25 = vld [vmem:[#allocation8 + $0x130] ss:$8 sps:$4 sm:$0xff]  }
 0x2f8   : > { %v1929_v20 = vsel %vm5074_vm15, %v1889_v47, 0.0  ;;  %v5173_v61 = vpack.c.bf16 %v1958_v17, %v1956_v57  ;;  %v1862_v49 = vadd.f32 %v1846_v8, %v1771_v29  ;;  %v1864_v1 = vadd.f32 %v1848_v31, %v1775_v62  ;;  %2655 = vmatpush1.bf16.msra.mxu1 %v4144_v30  ;;  %v4150_v57 = vld [vmem:[#allocation8 + $0x120] ss:$8 sps:$4 sm:$0xff]  }
 0x2f9   : > { %v5531_v12 = vand.u32 7, %v4873_v13  ;;  %v1809_v39 = vsel %vm1805_vm3, %v1800_v44, %v1802_v18  ;;  %v1884_v47 = vrot.slane %v5117_v21, 1  ;;  %v1777_v59 = vadd.f32 %v1776_v34, %v4953_v35  ;;  %v1780_v8 = vpop.f32.mrf.mxu0  ;;  %2656 = vmatprep.subr.bf16.mxu1 %v4149_v58  ;;  %v4152_v13 = vld [vmem:[#allocation8 + $0x124] ss:$8 sps:$4 sm:$0xff]  }
 0x2fa   : > { %v5191_v36 = vpack.c.bf16 %v1957_v26, %v1955_v23  ;;  %v1928_v29 = vsel %vm5030_vm12, %v1892_v4, 0.0  ;;  %v1945_v51 = vadd.f32 %v1929_v20, %v1864_v1  ;;  %v1849_v30 = vsel %vm5057_vm14, %v1811_v15, 0.0  ;;  %3585 = vmatprep.mubr.msk.bf16.mxu1 %vm2143_vm13, %v5173_v61  ;;  %3617 = vmatprep.mubr.msk.bf16.mxu0 %vm2143_vm13, %v5173_v61  ;;  %v4153_v1 = vld [vmem:[#allocation8 + $0x110] ss:$8 sps:$4 sm:$0xff]  }
 0x2fb   : > { %vm5181_vm6 = vcmp.lt.s32.totalorder %v5531_v12, 7  ;;  %v1850_v44 = vsel %vm5099_vm2, %v1808_v38, 0.0  ;;  %v1944_v21 = vadd.f32 %v1928_v29, %v1863_v24  ;;  %v1865_v26 = vadd.f32 %v1849_v30, %v1777_v59  ;;  %v1782_v28 = vpop.f32.mrf.mxu0 }
 0x2fc   : > { %v1930_v31 = vsel %vm5074_vm15, %v1890_v16, 0.0  ;;  %v1851_v4 = vsel %vm5099_vm2, %v1809_v39, 0.0  ;;  %2199 = vmatmul.mubr.bf16.gmra.mxu1 %v5191_v36  ;;  %2470 = vmatmul.mubr.bf16.gmra.mxu0 %v5191_v36  ;;  %v1943_v22 = vadd.f32 %v1927_v48, %v1862_v49  ;;  %v1781_v15 = vadd.f32 %v1780_v8, %v4926_v52 }
 0x2fd   : > { %v1783_v58 = vadd.f32 %v1782_v28, %v4953_v35  ;;  %2657 = vmatpush1.bf16.msra.mxu1 %v4147_v25  ;;  %v5534_v19 = vrot.slane %v4858_v5, 7  ;;  %v1887_v14 = vsel %vm1886_vm1, %v1882_v53, %v1884_v47  ;;  %v5535_v48 = vrot.slane %v4818_v41, 1  ;;  %v1784_v62 = vpop.f32.mrf.mxu0  ;;  %v4162_v28 = vld [vmem:[#allocation8 + $0xe0] ss:$8 sps:$4 sm:$0xff]  }
 0x2fe   : > { %v1888_v5 = vsel %vm1886_vm1, %v1883_v55, %v1885_v63  ;;  %v1946_v56 = vadd.f32 %v1930_v31, %v1865_v26  ;;  %2658 = vmatprep.subr.bf16.mxu1 %v4152_v13  ;;  %v1961_v38 = vmax.f32 %v1945_v51, 0.0  ;;  %v1785_v0 = vadd.f32 %v1784_v62, %v4926_v52  ;;  %v4156_v13 = vld [vmem:[#allocation8 + $0x100] ss:$8 sps:$4 sm:$0xff]   ;;  %v4164_v31 = vld [vmem:[#allocation8 + $0xe4] ss:$8 sps:$4 sm:$0xff]  }
 0x2ff   : > { %v1806_v42 = vsel %vm1805_vm3, %v1801_v40, %v5534_v19  ;;  %v1901_v17 = vsel %vm1886_vm1, %v1884_v47, %v5535_v48  ;;  %v4155_v40 = vld [vmem:[#allocation8 + $0x114] ss:$8 sps:$4 sm:$0xff]   ;;  %v1867_v54 = vadd.f32 %v1851_v4, %v1783_v58  ;;  %v5536_v53 = vrot.slane %v4897_v32, 7  ;;  %v1786_v20 = vpop.f32.mrf.mxu0  ;;  %v4168_v58 = vld [vmem:[#allocation8 + $0x1a0] ss:$8 sps:$4 sm:$0xff]  }
 0x300   : > { %v5537_v9 = vrot.slane %v4824_v45, 1  ;;  %v1960_v16 = vmax.f32 %v1944_v21, 0.0  ;;  %v1962_v23 = vmax.f32 %v1946_v56, 0.0  ;;  %v1852_v24 = vsel %vm5142_vm4, %v1806_v42, 0.0  ;;  %v4159_v21 = vld [vmem:[#allocation8 + $0xf0] ss:$8 sps:$4 sm:$0xff]  }
 0x301   : > { %v1807_v41 = vsel %vm1805_vm3, %v1802_v18, %v5536_v53  ;;  %v1959_v34 = vmax.f32 %v1943_v22, 0.0  ;;  %v1866_v52 = vadd.f32 %v1850_v44, %v1781_v15  ;;  %v1868_v49 = vadd.f32 %v1852_v24, %v1785_v0  ;;  %2659 = vmatpush1.bf16.msra.mxu1 %v4150_v57  ;;  %v4167_v4 = vld [vmem:[#allocation8 + $0x1b4] ss:$8 sps:$4 sm:$0xff]   ;;  %v4165_v22 = vld [vmem:[#allocation8 + $0x1b0] ss:$8 sps:$4 sm:$0xff]   ;;  %v4190_v0 = vld [vmem:[#allocation10] sm:$0xff]  }
 0x302   : > { %v1902_v55 = vsel %vm1886_vm1, %v1885_v63, %v5537_v9  ;;  %v1787_v32 = vadd.f32 %v1786_v20, %v4953_v35  ;;  %v5243_v60 = vpack.c.bf16 %v1962_v23, %v1960_v16  ;;  %v1932_v45 = vsel %vm5181_vm6, %v1888_v5, 0.0  ;;  %2660 = vmatprep.subr.bf16.mxu1 %v4155_v40  ;;  %v4158_v35 = vld [vmem:[#allocation8 + $0x104] ss:$8 sps:$4 sm:$0xff]   ;;  %v4173_v19 = vld [vmem:[#allocation8 + $0x194] ss:$8 sps:$4 sm:$0xff]  }
 0x303   : > { %v1933_v11 = vsel %vm5163_vm5, %v1901_v17, 0.0  ;;  %v1853_v18 = vsel %vm5142_vm4, %v1807_v41, 0.0  ;;  %v1948_v12 = vadd.f32 %v1932_v45, %v1867_v54  ;;  %v5251_v47 = vpack.c.bf16 %v1961_v38, %v1959_v34  ;;  %v4170_v15 = vld [vmem:[#allocation8 + $0x1a4] ss:$8 sps:$4 sm:$0xff]   ;;  %v4171_v42 = vld [vmem:[#allocation8 + $0x190] ss:$8 sps:$4 sm:$0xff]  }
 0x304   : > { %v1949_v25 = vadd.f32 %v1933_v11, %v1868_v49  ;;  %v1869_v39 = vadd.f32 %v1853_v18, %v1787_v32  ;;  %v1931_v63 = vsel %vm5181_vm6, %v1887_v14, 0.0  ;;  %v1934_v59 = vsel %vm5163_vm5, %v1902_v55, 0.0  ;;  %3586 = vmatprep.mubr.msk.bf16.mxu1 %vm2143_vm13, %v5243_v60  ;;  %3618 = vmatprep.mubr.msk.bf16.mxu0 %vm2143_vm13, %v5243_v60  ;;  %v4176_v57 = vld [vmem:[#allocation8 + $0x184] ss:$8 sps:$4 sm:$0xff]   ;;  %v4174_v14 = vld [vmem:[#allocation8 + $0x180] ss:$8 sps:$4 sm:$0xff]  }
 0x305   : > { %v1947_v2 = vadd.f32 %v1931_v63, %v1866_v52  ;;  %2209 = vmatmul.mubr.bf16.gmra.mxu1 %v5251_v47  ;;  %2480 = vmatmul.mubr.bf16.gmra.mxu0 %v5251_v47  ;;  %v1964_v29 = vmax.f32 %v1948_v12, 0.0  ;;  %v4179_v48 = vld [vmem:[#allocation8 + $0x174] ss:$8 sps:$4 sm:$0xff]   ;;  %v4182_v17 = vld [vmem:[#allocation8 + $0x164] ss:$8 sps:$4 sm:$0xff]   ;;  %v5538_v62 = vmov 0  }
 0x306   : > { %v1950_v8 = vadd.f32 %v1934_v59, %v1869_v39  ;;  %2661 = vmatpush1.bf16.msra.mxu1 %v4153_v1  ;;  %v1965_v46 = vmax.f32 %v1949_v25, 0.0  ;;  %v4180_v5 = vld [vmem:[#allocation8 + $0x160] ss:$8 sps:$4 sm:$0xff]   ;;  %v4183_v56 = vld [vmem:[#allocation10 + $0x38] sm:$0xff]   ;;  %v4184_v40 = vld [vmem:[#allocation10 + $0x30] sm:$0xff]  }
 0x307   : > { %2662 = vmatprep.subr.bf16.mxu1 %v4158_v35  ;;  %v1963_v30 = vmax.f32 %v1947_v2, 0.0  ;;  %v4185_v38 = vld [vmem:[#allocation10 + $0x28] sm:$0xff]   ;;  %v4186_v54 = vld [vmem:[#allocation10 + $0x20] sm:$0xff]   ;;  %v4191_v53 = vld [vmem:[#allocation10 + $0x58] sm:$0xff]  }
 0x308   : > { %v1966_v51 = vmax.f32 %v1950_v8, 0.0  ;;  %v4192_v41 = vld [vmem:[#allocation10 + $0x50] sm:$0xff]   ;;  %v4193_v9 = vld [vmem:[#allocation10 + $0x48] sm:$0xff]   ;;  %v4195_v55 = vld [vmem:[#allocation11 + $0x78] sm:$0xff]  }
 0x309   : > { %v1973_v26 = vpack.c.bf16 %v1965_v46, %v1963_v30  ;;  %v4196_v16 = vld [vmem:[#allocation11 + $0x38] sm:$0xff]   ;;  %v4197_v23 = vld [vmem:[#allocation11 + $0x70] sm:$0xff]   ;;  %3743 = vmatprep.subr.bf16.mxu0 %v4195_v55  ;;  %v4199_v20 = vld [vmem:[#allocation11 + $0x68] sm:$0xff]  }
 0x30a   : > { %v1974_v44 = vpack.c.bf16 %v1966_v51, %v1964_v29  ;;  %2663 = vmatpush1.bf16.msra.mxu1 %v4156_v13  ;;  %3744 = vmatpush3.bf16.msra.mxu0 %v4196_v16  ;;  %v4198_v24 = vld [vmem:[#allocation11 + $0x30] sm:$0xff]   ;;  %v4200_v34 = vld [vmem:[#allocation11 + $0x28] sm:$0xff]   ;;  %v4201_v52 = vld [vmem:[#allocation11 + $0x60] sm:$0xff]  }
 0x30b   : > { %2664 = vmatprep.subr.bf16.mxu1 %v4161_v6  ;;  %3745 = vmatprep.subr.bf16.mxu0 %v4197_v23  ;;  %v4202_v49 = vld [vmem:[#allocation11 + $0x20] sm:$0xff]   ;;  %v4203_v32 = vld [vmem:[#allocation11 + $0x58] sm:$0xff]   ;;  %v5540_v11 = vld [vmem:[#allocation21_spill] sm:$0xff] }
 0x30c   : > { %3587 = vmatprep.mubr.msk.bf16.mxu1 %vm2143_vm13, %v1974_v44  ;;  %3619 = vmatprep.mubr.msk.bf16.mxu0 %vm2143_vm13, %v1974_v44  ;;  %v4204_v45 = vld [vmem:[#allocation11 + $0x18] sm:$0xff]   ;;  %v4207_v18 = vld [vmem:[#allocation11 + $0x48] sm:$0xff]   ;;  %v4210_v1 = vld [vmem:[#allocation11] sm:$0xff]  }
 0x30d   : > { %2219 = vmatmul.mubr.bf16.gmra.mxu1 %v1973_v26  ;;  %2490 = vmatmul.mubr.bf16.gmra.mxu0 %v1973_v26 }
 0x30e   : > { %2665 = vmatpush1.bf16.msra.mxu1 %v4159_v21  ;;  %3648 = vmatprep.mubr.msk.bf16.mxu1 %vm2143_vm13, %v5104_v7  ;;  %v4177_v7 = vld [vmem:[#allocation8 + $0x170] ss:$8 sps:$4 sm:$0xff]  }
 0x30f   : > { %2666 = vmatprep.subr.bf16.mxu1 %v4164_v31  ;;  %3746 = vmatpush3.bf16.msra.mxu0 %v4198_v24 }
 0x310   : > { %3747 = vmatprep.subr.bf16.mxu0 %v4199_v20 }
 0x312   : > { %2667 = vmatpush1.bf16.msra.mxu1 %v4162_v28 }
 0x313   : > { %2672 = vmatprep.subr.bf16.mxu1 %v4167_v4  ;;  %3748 = vmatpush3.bf16.msra.mxu0 %v4200_v34 }
 0x314   : > { %3749 = vmatprep.subr.bf16.mxu0 %v4201_v52 }
 0x316   : > { %2673 = vmatpush2.bf16.msra.mxu1 %v4165_v22 }
 0x317   : > { %2674 = vmatprep.subr.bf16.mxu1 %v4170_v15  ;;  %3750 = vmatpush3.bf16.msra.mxu0 %v4202_v49 }
 0x318   : > { %3751 = vmatprep.subr.bf16.mxu0 %v4203_v32 }
 0x31a   : > { %2675 = vmatpush2.bf16.msra.mxu1 %v4168_v58  ;;  %v2500_v58 = vld [vmem:[%s5437_s6] sm:$0x3] }
 0x31b   : > { %2676 = vmatprep.subr.bf16.mxu1 %v4173_v19  ;;  %3752 = vmatpush3.bf16.msra.mxu0 %v4204_v45 }
 0x31e   : > { %2677 = vmatpush2.bf16.msra.mxu1 %v4171_v42  ;;  %v5541_v42 = vld [vmem:[#allocation20_spill] sm:$0xff] }
 0x31f   : > { %2678 = vmatprep.subr.bf16.mxu1 %v4176_v57  ;;  %v5319_v57 = vrot.slane %v2500_v58, %v5541_v42 }
 0x322   : > { %2679 = vmatpush2.bf16.msra.mxu1 %v4174_v14 }
 0x323   : > { %2680 = vmatprep.subr.bf16.mxu1 %v4179_v48  ;;  %v5542_v48 = vld [vmem:[#allocation19_spill] sm:$0xff] }
 0x326   : > { %2681 = vmatpush2.bf16.msra.mxu1 %v4177_v7  ;;  %v5322_v7 = vrot.slane %v2500_v58, %v5542_v48 }
 0x327   : > { %2682 = vmatprep.subr.bf16.mxu1 %v4182_v17 }
 0x32a   : > { %2683 = vmatpush2.bf16.msra.mxu1 %v4180_v5 }
 0x32b   : > { %3146 = vmatprep.subr.bf16.mxu1 %v5538_v62 }
 0x32d   : > { %2685 = vmatmul.mubr.bf16.vlgmr.msra.gmra.mxu1 %v5110_v27  ;;  %v4187_v27 = vld [vmem:[#allocation10 + $0x18] sm:$0xff]  }
 0x32e   : > { %3649 = vmatprep.mubr.msk.bf16.mxu1 %vm2143_vm13, %v5173_v61  ;;  %3147 = vmatpush1.bf16.msra.mxu1 %v4183_v56  ;;  %v4188_v61 = vld [vmem:[#allocation10 + $0x10] sm:$0xff]  }
 0x32f   : > { %3148 = vmatprep.subr.bf16.mxu1 %v5538_v62 }
 0x332   : > { %3149 = vmatpush1.bf16.msra.mxu1 %v4184_v40 }
 0x333   : > { %3150 = vmatprep.subr.bf16.mxu1 %v5538_v62 }
 0x335   : > { %2695 = vmatmul.mubr.bf16.gmra.mxu1 %v5191_v36  ;;  %v4189_v36 = vld [vmem:[#allocation10 + $0x8] sm:$0xff]  }
 0x336   : > { %3650 = vmatprep.mubr.msk.bf16.mxu1 %vm2143_vm13, %v5243_v60  ;;  %3151 = vmatpush1.bf16.msra.mxu1 %v4185_v38  ;;  %v5539_v60 = vld [vmem:[#allocation22_spill] sm:$0xff] }
 0x337   : > { %3152 = vmatprep.subr.bf16.mxu1 %v5538_v62 }
 0x33a   : > { %3153 = vmatpush1.bf16.msra.mxu1 %v4186_v54 }
 0x33b   : > { %3154 = vmatprep.subr.bf16.mxu1 %v5538_v62 }
 0x33d   : > { %2705 = vmatmul.mubr.bf16.gmra.mxu1 %v5251_v47 }
 0x33e   : > { %3651 = vmatprep.mubr.msk.bf16.mxu1 %vm2143_vm13, %v1974_v44  ;;  %3155 = vmatpush1.bf16.msra.mxu1 %v4187_v27 }
 0x33f   : > { %3156 = vmatprep.subr.bf16.mxu1 %v5538_v62 }
 0x342   : > { %3157 = vmatpush1.bf16.msra.mxu1 %v4188_v61 }
 0x343   : > { %3158 = vmatprep.subr.bf16.mxu1 %v5538_v62 }
 0x345   : > { %2715 = vmatmul.mubr.bf16.gmra.mxu1 %v1973_v26 }
 0x346   : > { %3159 = vmatpush1.bf16.msra.mxu1 %v4189_v36  ;;  %3680 = vmatprep.mubr.msk.bf16.mxu1 %vm1126_vm0, %v4751_v50  ;;  %v4194_v50 = vld [vmem:[#allocation10 + $0x40] sm:$0xff]  }
 0x347   : > { %3160 = vmatprep.subr.bf16.mxu1 %v5538_v62 }
 0x34a   : > { %3161 = vmatpush1.bf16.msra.mxu1 %v4190_v0 }
 0x34b   : > { %3170 = vmatprep.subr.bf16.mxu1 %v5538_v62 }
 0x34e   : > { %3171 = vmatpush2.bf16.msra.mxu1 %v4191_v53 }
 0x34f   : > { %3172 = vmatprep.subr.bf16.mxu1 %v5538_v62 }
 0x352   : > { %3173 = vmatpush2.bf16.msra.mxu1 %v4192_v41 }
 0x353   : > { %3174 = vmatprep.subr.bf16.mxu1 %v5538_v62 }
 0x356   : > { %3175 = vmatpush2.bf16.msra.mxu1 %v4193_v9 }
 0x357   : > { %3176 = vmatprep.subr.bf16.mxu1 %v5538_v62 }
 0x35a   : > { %3177 = vmatpush2.bf16.msra.mxu1 %v4194_v50 }
 0x35d   : > { %3179 = vmatmul.mubr.bf16.vlgmr.msra.gmra.mxu1 %v4747_v43  ;;  %v4205_v43 = vld [vmem:[#allocation11 + $0x50] sm:$0xff]  }
 0x35e   : > { %3681 = vmatprep.mubr.msk.bf16.mxu1 %vm1126_vm0, %v4761_v10  ;;  %v4206_v10 = vld [vmem:[#allocation11 + $0x10] sm:$0xff]   ;;  %3753 = vmatprep.subr.bf16.mxu0 %v4205_v43 }
 0x35f   : > { %3754 = vmatpush3.bf16.msra.mxu0 %v4206_v10 }
 0x360   : > { %3755 = vmatprep.subr.bf16.mxu0 %v4207_v18 }
 0x365   : > { %3187 = vmatmul.mubr.bf16.gmra.mxu1 %v4757_v3  ;;  %v4208_v3 = vld [vmem:[#allocation11 + $0x8] sm:$0xff]  }
 0x366   : > { %3682 = vmatprep.mubr.msk.bf16.mxu1 %vm1126_vm0, %v4772_v37  ;;  %3756 = vmatpush3.bf16.msra.mxu0 %v4208_v3  ;;  %v4209_v37 = vld [vmem:[#allocation11 + $0x40] sm:$0xff]  }
 0x367   : > { %3757 = vmatprep.subr.bf16.mxu0 %v4209_v37 }
 0x36a   : > { %3758 = vmatpush3.bf16.msra.mxu0 %v4210_v1 }
 0x36d   : > { %3195 = vmatmul.mubr.bf16.gmra.mxu1 %v4768_v33 }
 0x36e   : > { %3683 = vmatprep.mubr.msk.bf16.mxu1 %vm1126_vm0, %v5539_v60 }
 0x375   : > { %3203 = vmatmul.mubr.bf16.gmra.mxu1 %v5540_v11 }
 0x3b3   : > { %v2190_v33 = vpop.f32.mrf.mxu1  ;;  %v2461_v12 = vpop.f32.mrf.mxu0 }
 0x3b5   : > { %v2192_v25 = vpop.f32.mrf.mxu1  ;;  %v2463_v39 = vpop.f32.mrf.mxu0 }
 0x3b7   : > { %v2194_v47 = vpop.f32.mrf.mxu1  ;;  %v2465_v26 = vpop.f32.mrf.mxu0 }
 0x3b9   : > { %v2196_v35 = vpop.f32.mrf.mxu1  ;;  %v2467_v31 = vpop.f32.mrf.mxu0 }
 0x3bc   : > { %v2200_v63 = vpop.f32.mrf.mxu1  ;;  %v2471_v28 = vpop.f32.mrf.mxu0 }
 0x3be   : > { %v2202_v59 = vpop.f32.mrf.mxu1  ;;  %v2473_v4 = vpop.f32.mrf.mxu0 }
 0x3c0   : > { %v5299_v2 = vpop.f32.mrf.mxu1  ;;  %v2475_v22 = vpop.f32.mrf.mxu0 }
 0x3c2   : > { %v5301_v8 = vpop.f32.mrf.mxu1  ;;  %v2477_v15 = vpop.f32.mrf.mxu0 }
 0x3c5   : > { %v5303_v13 = vpop.f32.mrf.mxu1  ;;  %v2481_v14 = vpop.f32.mrf.mxu0 }
 0x3c7   : > { %v5305_v29 = vpop.f32.mrf.mxu1  ;;  %v2483_v40 = vpop.f32.mrf.mxu0 }
 0x3c9   : > { %v5307_v46 = vpop.f32.mrf.mxu1  ;;  %v2485_v55 = vpop.f32.mrf.mxu0 }
 0x3cb   : > { %v5309_v51 = vpop.f32.mrf.mxu1  ;;  %v2487_v60 = vpop.f32.mrf.mxu0 }
 0x3cd   : > { %v5311_v6 = vpop.f32.mrf.mxu1 }
 0x3cf   : > { %v5313_v30 = vpop.f32.mrf.mxu1 }
 0x3d1   : > { %v2224_v44 = vpop.f32.mrf.mxu1 }
 0x3d3   : > { %v2226_v21 = vpop.f32.mrf.mxu1 }
 0x3ed   : > { %v2686_v19 = vpop.f32.mrf.mxu1 }
 0x3ee   : > { %v2687_v38 = vadd.f32 %v2686_v19, %v5322_v7 }
 0x3ef   : > { %v2688_v17 = vpop.f32.mrf.mxu1 }
 0x3f0   : > { %v2689_v56 = vadd.f32 %v2688_v17, %v5319_v57  ;;  %v2805_v16 = vadd.f32 %v2687_v38, %v2465_v26 }
 0x3f1   : > { %v2690_v5 = vpop.f32.mrf.mxu1 }
 0x3f2   : > { %v2691_v62 = vadd.f32 %v2690_v5, %v5322_v7  ;;  %v2806_v0 = vadd.f32 %v2689_v56, %v2467_v31  ;;  %v2821_v45 = vmax.f32 %v2805_v16, 0.0 }
 0x3f3   : > { %v2692_v54 = vpop.f32.mrf.mxu1 }
 0x3f4   : > { %v2759_v27 = vadd.f32 %v2691_v62, %v2190_v33  ;;  %v2693_v61 = vadd.f32 %v2692_v54, %v5319_v57  ;;  %v2822_v49 = vmax.f32 %v2806_v0, 0.0 }
 0x3f5   : > { %v2696_v36 = vpop.f32.mrf.mxu1 }
 0x3f6   : > { %v2807_v53 = vadd.f32 %v2759_v27, %v2471_v28  ;;  %v2760_v41 = vadd.f32 %v2693_v61, %v2192_v25  ;;  %v2697_v9 = vadd.f32 %v2696_v36, %v5322_v7 }
 0x3f7   : > { %v2698_v23 = vpop.f32.mrf.mxu1 }
 0x3f8   : > { %v2808_v50 = vadd.f32 %v2760_v41, %v2473_v4  ;;  %v2699_v24 = vadd.f32 %v2698_v23, %v5319_v57  ;;  %v2823_v20 = vmax.f32 %v2807_v53, 0.0  ;;  %v2761_v34 = vadd.f32 %v2697_v9, %v2194_v47  ;;  %v2491_v47 = vpop.f32.mrf.mxu0 }
 0x3f9   : > { %v2700_v52 = vpop.f32.mrf.mxu1 }
 0x3fa   : > { %v2824_v32 = vmax.f32 %v2808_v50, 0.0  ;;  %v2762_v43 = vadd.f32 %v2699_v24, %v2196_v35  ;;  %v2701_v10 = vadd.f32 %v2700_v52, %v5322_v7  ;;  %v2837_v37 = vpack.c.bf16 %v2823_v20, %v2821_v45 }
 0x3fb   : > { %v2702_v11 = vpop.f32.mrf.mxu1  ;;  %v2809_v1 = vadd.f32 %v2761_v34, %v2475_v22 }
 0x3fc   : > { %v2703_v18 = vadd.f32 %v2702_v11, %v5319_v57  ;;  %v2838_v3 = vpack.c.bf16 %v2824_v32, %v2822_v49  ;;  %v2763_v33 = vadd.f32 %v2701_v10, %v2200_v63  ;;  %v2810_v44 = vadd.f32 %v2762_v43, %v2477_v15 }
 0x3fd   : > { %v2706_v12 = vpop.f32.mrf.mxu1  ;;  %v2825_v28 = vmax.f32 %v2809_v1, 0.0 }
 0x3fe   : > { %v2764_v25 = vadd.f32 %v2703_v18, %v2202_v59  ;;  %v2707_v39 = vadd.f32 %v2706_v12, %v5322_v7  ;;  %3029 = vmatprep.mubr.bf16.mxu0 %v2838_v3  ;;  %v2811_v21 = vadd.f32 %v2763_v33, %v2481_v14  ;;  %v2493_v59 = vpop.f32.mrf.mxu0  ;;  %v2826_v42 = vmax.f32 %v2810_v44, 0.0 }
 0x3ff   : > { %v2708_v26 = vpop.f32.mrf.mxu1  ;;  %3030 = vmatmul.mubr.bf16.vlgmr.msra.gmra.mxu0 %v2837_v37 }
 0x400   : > { %v2812_v35 = vadd.f32 %v2764_v25, %v2483_v40  ;;  %v2709_v31 = vadd.f32 %v2708_v26, %v5319_v57  ;;  %v2827_v4 = vmax.f32 %v2811_v21, 0.0  ;;  %v2765_v58 = vadd.f32 %v2707_v39, %v5299_v2  ;;  %v2495_v27 = vpop.f32.mrf.mxu0 }
 0x401   : > { %v2710_v19 = vpop.f32.mrf.mxu1 }
 0x402   : > { %v2828_v22 = vmax.f32 %v2812_v35, 0.0  ;;  %v2711_v63 = vadd.f32 %v2710_v19, %v5322_v7  ;;  %v2766_v48 = vadd.f32 %v2709_v31, %v5301_v8  ;;  %v2839_v15 = vpack.c.bf16 %v2827_v4, %v2825_v28  ;;  %v2497_v50 = vpop.f32.mrf.mxu0 }
 0x403   : > { %v2712_v17 = vpop.f32.mrf.mxu1  ;;  %v2813_v56 = vadd.f32 %v2765_v58, %v2485_v55  ;;  %v5355_v58 = vld [vmem:[%s5440_s9] ss:$0 sm:$0xff] }
 0x404   : > { %v2767_v14 = vadd.f32 %v2711_v63, %v5303_v13  ;;  %v2713_v5 = vadd.f32 %v2712_v17, %v5319_v57  ;;  %v2840_v40 = vpack.c.bf16 %v2828_v22, %v2826_v42  ;;  %v2814_v61 = vadd.f32 %v2766_v48, %v2487_v60  ;;  %v4215_v48 = vld [vmem:[%s4699_s21] sm:$0xff]  }
 0x405   : > { %v2716_v62 = vpop.f32.mrf.mxu1  ;;  %v2829_v41 = vmax.f32 %v2813_v56, 0.0  ;;  %v462_v17 = vunpack.c.l.bf16 %v4215_v48  ;;  %v463_v56 = vunpack.c.h.bf16 %v4215_v48 }
 0x406   : > { %v2815_v38 = vadd.f32 %v2767_v14, %v2491_v47  ;;  %v2768_v2 = vadd.f32 %v2713_v5, %v5305_v29  ;;  %v2717_v54 = vadd.f32 %v2716_v62, %v5322_v7  ;;  %3037 = vmatprep.mubr.bf16.mxu0 %v2840_v40  ;;  %v2830_v24 = vmax.f32 %v2814_v61, 0.0 }
 0x407   : > { %v2718_v36 = vpop.f32.mrf.mxu1  ;;  %3038 = vmatmul.mubr.bf16.gmra.mxu0 %v2839_v15 }
 0x408   : > { %v2831_v0 = vmax.f32 %v2815_v38, 0.0  ;;  %v2816_v8 = vadd.f32 %v2768_v2, %v2493_v59  ;;  %v2769_v53 = vadd.f32 %v2717_v54, %v5307_v46  ;;  %v2719_v13 = vadd.f32 %v2718_v36, %v5319_v57 }
 0x409   : > { %v2720_v9 = vpop.f32.mrf.mxu1 }
 0x40a   : > { %v2832_v55 = vmax.f32 %v2816_v8, 0.0  ;;  %v2817_v16 = vadd.f32 %v2769_v53, %v2495_v27  ;;  %v2770_v23 = vadd.f32 %v2719_v13, %v5309_v51  ;;  %v2721_v29 = vadd.f32 %v2720_v9, %v5322_v7 }
 0x40b   : > { %v2722_v20 = vpop.f32.mrf.mxu1  ;;  %v2841_v34 = vpack.c.bf16 %v2831_v0, %v2829_v41 }
 0x40c   : > { %v2818_v52 = vadd.f32 %v2770_v23, %v2497_v50  ;;  %v2771_v49 = vadd.f32 %v2721_v29, %v5311_v6  ;;  %v2723_v46 = vadd.f32 %v2722_v20, %v5319_v57  ;;  %v2842_v32 = vpack.c.bf16 %v2832_v55, %v2830_v24  ;;  %v4216_v55 = vld [vmem:[%s4699_s21 + $0x8] sm:$0xff]  }
 0x40d   : > { %v2833_v60 = vmax.f32 %v2817_v16, 0.0  ;;  %v464_v16 = vunpack.c.l.bf16 %v4216_v55  ;;  %v465_v20 = vunpack.c.h.bf16 %v4216_v55 }
 0x40e   : > { %v2835_v45 = vmax.f32 %v2771_v49, 0.0  ;;  %v2772_v43 = vadd.f32 %v2723_v46, %v5313_v30  ;;  %3045 = vmatprep.mubr.bf16.mxu0 %v2842_v32  ;;  %v2834_v10 = vmax.f32 %v2818_v52, 0.0 }
 0x40f   : > { %3046 = vmatmul.mubr.bf16.gmra.mxu0 %v2841_v34 }
 0x410   : > { %v2836_v11 = vmax.f32 %v2772_v43, 0.0  ;;  %v2843_v51 = vpack.c.bf16 %v2835_v45, %v2833_v60 }
 0x412   : > { %v2844_v7 = vpack.c.bf16 %v2836_v11, %v2834_v10 }
 0x414   : > { %3053 = vmatprep.mubr.bf16.mxu0 %v2844_v7 }
 0x417   : > { %3054 = vmatmul.mubr.bf16.gmra.mxu0 %v2843_v51  ;;  %v4217_v51 = vld [vmem:[%s4699_s21 + $0x10] sm:$0xff]  }
 0x418   : > { %v466_v7 = vunpack.c.l.bf16 %v4217_v51 }
 0x41d   : > { %v3180_v18 = vpop.f32.mrf.mxu1 }
 0x41f   : > { %v3182_v3 = vpop.f32.mrf.mxu1 }
 0x421   : > { %v3183_v37 = vpop.f32.mrf.mxu1 }
 0x423   : > { %v3185_v1 = vpop.f32.mrf.mxu1 }
 0x425   : > { %v3188_v6 = vpop.f32.mrf.mxu1 }
 0x427   : > { %v3190_v33 = vpop.f32.mrf.mxu1 }
 0x429   : > { %v3191_v57 = vpop.f32.mrf.mxu1 }
 0x42b   : > { %v3193_v12 = vpop.f32.mrf.mxu1 }
 0x42d   : > { %v3196_v25 = vpop.f32.mrf.mxu1 }
 0x42f   : > { %v3198_v39 = vpop.f32.mrf.mxu1 }
 0x431   : > { %v3199_v30 = vpop.f32.mrf.mxu1 }
 0x433   : > { %v3201_v47 = vpop.f32.mrf.mxu1 }
 0x435   : > { %v5348_v44 = vpop.f32.mrf.mxu1 }
 0x437   : > { %v3206_v21 = vpop.f32.mrf.mxu1 }
 0x439   : > { %v5350_v26 = vpop.f32.mrf.mxu1 }
 0x43b   : > { %v3209_v35 = vpop.f32.mrf.mxu1 }
 0x4bf   : > { %v3759_v31 = vpop.f32.mrf.mxu0 }
 0x4c1   : > { %v3760_v28 = vpop.f32.mrf.mxu0 }
 0x4c2   : > { %v3761_v4 = vadd.f32 %v3760_v28, %v3759_v31 }
 0x4c3   : > { %v3762_v19 = vpop.f32.mrf.mxu0 }
 0x4c4   : > { %v3181_v22 = vadd.f32 %v3761_v4, %v3180_v18 }
 0x4c5   : > { %v3763_v63 = vpop.f32.mrf.mxu0 }
 0x4c6   : > { %v3218_v59 = vadd.f32 %v5355_v58, %v3181_v22  ;;  %v3764_v42 = vadd.f32 %v3763_v63, %v3762_v19  ;;  %v4218_v22 = vld [vmem:[%s4699_s21 + $0x18] sm:$0xff]  }
 0x4c7   : > { %v3765_v5 = vpop.f32.mrf.mxu0  ;;  %v468_v63 = vunpack.c.l.bf16 %v4218_v22 }
 0x4c8   : > { %v3226_v15 = vmul.f32 0.2, %v3218_v59  ;;  %v3184_v14 = vadd.f32 %v3764_v42, %v3183_v37 }
 0x4c9   : > { %v3766_v40 = vpop.f32.mrf.mxu0 }
 0x4ca   : > { %v3219_v62 = vadd.f32 %v5355_v58, %v3184_v14  ;;  %v3767_v38 = vadd.f32 %v3766_v40, %v3765_v5  ;;  %v3234_v2 = vadd.f32 %v3226_v15, %v462_v17  ;;  %v469_v15 = vunpack.c.h.bf16 %v4218_v22 }
 0x4cb   : > { %v3768_v27 = vpop.f32.mrf.mxu0 }
 0x4cc   : > { %v3227_v54 = vmul.f32 0.2, %v3219_v62  ;;  %v3189_v61 = vadd.f32 %v3767_v38, %v3188_v6  ;;  %v3242_v13 = vmax.f32 %v3234_v2, 0.0 }
 0x4cd   : > { %v3769_v0 = vpop.f32.mrf.mxu0 }
 0x4ce   : > { %v3235_v36 = vadd.f32 %v3227_v54, %v463_v56  ;;  %v3220_v8 = vadd.f32 %v5355_v58, %v3189_v61  ;;  %v3770_v53 = vadd.f32 %v3769_v0, %v3768_v27 }
 0x4cf   : > { %v3771_v9 = vpop.f32.mrf.mxu0 }
 0x4d0   : > { %v3243_v41 = vmax.f32 %v3235_v36, 0.0  ;;  %v3228_v23 = vmul.f32 0.2, %v3220_v8  ;;  %v3192_v29 = vadd.f32 %v3770_v53, %v3191_v57  ;;  %v467_v57 = vunpack.c.h.bf16 %v4217_v51 }
 0x4d1   : > { %v3772_v24 = vpop.f32.mrf.mxu0 }
 0x4d2   : > { %v3711_v50 = vpack.c.bf16 %v3243_v41, %v3242_v13  ;;  %v3221_v34 = vadd.f32 %v5355_v58, %v3192_v29  ;;  %v3773_v52 = vadd.f32 %v3772_v24, %v3771_v9  ;;  %v3236_v46 = vadd.f32 %v3228_v23, %v464_v16 }
 0x4d3   : > { %v3774_v49 = vpop.f32.mrf.mxu0 }
 0x4d4   : > { %3712 = vst [vmem:[%s5365_s3] sm:$0xff] %v3711_v50   ;;  %v3229_v32 = vmul.f32 0.2, %v3221_v34  ;;  %v3197_v60 = vadd.f32 %v3773_v52, %v3196_v25  ;;  %v3244_v3 = vmax.f32 %v3236_v46, 0.0 }
 0x4d5   : > { %v3775_v45 = vpop.f32.mrf.mxu0 }
 0x4d6   : > { %v3237_v43 = vadd.f32 %v3229_v32, %v465_v20  ;;  %v3222_v10 = vadd.f32 %v5355_v58, %v3197_v60  ;;  %v3776_v11 = vadd.f32 %v3775_v45, %v3774_v49 }
 0x4d7   : > { %v3777_v18 = vpop.f32.mrf.mxu0 }
 0x4d8   : > { %v3245_v37 = vmax.f32 %v3237_v43, 0.0  ;;  %v3230_v1 = vmul.f32 0.2, %v3222_v10  ;;  %v3200_v6 = vadd.f32 %v3776_v11, %v3199_v30 }
 0x4d9   : > { %v3778_v33 = vpop.f32.mrf.mxu0 }
 0x4da   : > { %v3716_v12 = vpack.c.bf16 %v3245_v37, %v3244_v3  ;;  %v3223_v39 = vadd.f32 %v5355_v58, %v3200_v6  ;;  %v3779_v25 = vadd.f32 %v3778_v33, %v3777_v18  ;;  %v3238_v21 = vadd.f32 %v3230_v1, %v466_v7 }
 0x4db   : > { %v3780_v47 = vpop.f32.mrf.mxu0 }
 0x4dc   : > { %3728 = vst [vmem:[%s5365_s3 + $0x8] sm:$0xff] %v3716_v12   ;;  %v3231_v35 = vmul.f32 0.2, %v3223_v39  ;;  %v3205_v31 = vadd.f32 %v3779_v25, %v5348_v44  ;;  %v3246_v59 = vmax.f32 %v3238_v21, 0.0 }
 0x4dd   : > { %v3781_v28 = vpop.f32.mrf.mxu0 }
 0x4de   : > { %v3239_v4 = vadd.f32 %v3231_v35, %v467_v57  ;;  %v3224_v19 = vadd.f32 %v5355_v58, %v3205_v31  ;;  %v3782_v30 = vadd.f32 %v3781_v28, %v3780_v47 }
 0x4e0   : > { %v3247_v42 = vmax.f32 %v3239_v4, 0.0  ;;  %v3232_v48 = vmul.f32 0.2, %v3224_v19  ;;  %v3208_v17 = vadd.f32 %v3782_v30, %v5350_v26 }
 0x4e2   : > { %v3721_v14 = vpack.c.bf16 %v3247_v42, %v3246_v59  ;;  %v3225_v44 = vadd.f32 %v5355_v58, %v3208_v17  ;;  %v3240_v5 = vadd.f32 %v3232_v48, %v468_v63 }
 0x4e4   : > { %3729 = vst [vmem:[%s5365_s3 + $0x10] sm:$0xff] %v3721_v14   ;;  %v3233_v56 = vmul.f32 0.2, %v3225_v44  ;;  %v3248_v40 = vmax.f32 %v3240_v5, 0.0 }
 0x4e6   : > { %v3241_v62 = vadd.f32 %v3233_v56, %v469_v15 }
 0x4e8   : > { %v3249_v38 = vmax.f32 %v3241_v62, 0.0 }
 0x4ea   : > { %v3726_v26 = vpack.c.bf16 %v3249_v38, %v3248_v40 }
 0x4ec   : > { %3730 = vst [vmem:[%s5365_s3 + $0x18] sm:$0xff] %v3726_v26  }
 0x4ed   : > { %4390 = shalt.err (!%p4387_p3)
}
 0x4ee   : > { %s4391_s30 = scalar_lea.hbm %s5383_s1, 512  ;;  %s4395_s3 = scalar_lea.hbm %s5441_s10, 1024 }
 0x4ef   : > { %p4392_p9 = scmp.ne.s32.totalorder %s5383_s1, %s4391_s30  ;;  %p4396_p13 = scmp.lt.s32.totalorder %s5383_s1, %s5441_s10 }
 0x4f0   : > { %p4397_p0 = scmp.lt.s32.totalorder %s4395_s3, %s4391_s30 }
 0x4f1   : > { %p4393_p6 = pnand %p4392_p9, %p5543_p4 }
 0x4f2   : > { %p4398_p2 = por %p4397_p0, %p4396_p13 }
 0x4f3   : > { %p4394_p12 = pneg %p4393_p6 }
 0x4f5   : > { %p4399_p8 = pnand %p4398_p2, %p4394_p12 }
 0x4f7   : > { %4402 = shalt.err (!%p4399_p8)
}
 0x4f8   : > { %s4470_s21 = smov 4  }
 0x4f9   : > { %3829 = dma.vmem_to_hbm [thread:$0]  (%p5543_p4), %s5385_s7, 512, %s5383_s1, %s3291_s20, %s4468_s24, %s4468_s24, %s4470_s21  }
 0x4fa PF: > { %s3319_s25 = sand.u32 1, %s4441_s13   ;;  %p5544_p10 = scmp.ne.s32.totalorder %s5471_s18, 0 }
 0x4fb   : > { %p5545_p11 = scmp.ge.s32.totalorder %s4453_s16, 2  ;;  %s3320_s19 = scalar_lea.sflag [#allocation4], %s3319_s25 }
 0x4fd   : > { %p3852_p7 = pnand %p5545_p11, %p5544_p10 }
 0x4ff   : > { %p3853_p5 = pneg %p3852_p7 }
 0x501   : > { %4436 = dma.done.wait (%p3853_p5), %s3320_s19, 512  }
 0x502   : > { %4438 = vsyncadd (%p3853_p5), %s3320_s19, 4294966784  ;;  %p26_p1 = scmp.ge.s32.totalorder %s4624_s26, 4   ;;  %s5546_s13 = smov %s4445_s14 }
 0x503   : > { %s5547_s14 = smov %s4449_s15  ;;  %s5548_s15 = smov %s4636_s11 }
 0x504   : > { %s5549_s16 = smov %s4624_s26  ;;  %28 = sbr.rel (!%p26_p1) target bundleno = 13 (0xd), region = 129 }
 0x509   :  { %3325 = vsyncpa [#allocation3], 1 }
 0x50a   :  { %3327 = vsyncpa [#allocation3 + $0x1], 1 }
 0x50b   :  { %3328 = vsyncpa [#allocation6], 1 }
 0x50c   :  { %3329 = vsyncpa [#allocation9], 1 }
 0x50d   :  { %3330 = vsyncpa [#allocation12], 1 }
 0x50e   :  { %3331 = vsyncpa [#allocation4], 1 }
 0x50f   :  { %3333 = vsyncpa [#allocation4 + $0x1], 1 }

</bundles_post_ra>
